<compile_context>
chip_gen: v7x
topology: tpu7x:2x2x1
jax: 0.10.0
libtpu: 0.0.40
codegen_flags: <defaults>
</compile_context>

<pallas_src>
import math

import jax
import jax.numpy as jnp
from jax.experimental import pallas as pl
from jax.experimental.pallas import tpu as pltpu
from jax.scipy.linalg import block_diag


_INV_SQRT2 = 1.0 / math.sqrt(2.0)


def _gelu_exact(x):
    # torch.nn.GELU() default = exact erf GELU.
    return 0.5 * x * (1.0 + jax.lax.erf(x * _INV_SQRT2))


# ---------------------------------------------------------------------------
# Fused kernel: one grid step = one batch element, all three mixings, both
# branches.  Working matrix z: rows = (channel, [num tokens ; size tokens]),
# lanes = d_model.
# ---------------------------------------------------------------------------
def _patch_mlp_kernel(
    x_ref,
    ch_ka_ref, ch_ba_ref, ch_k2_ref, ch_b2_ref,
    tk_ka_ref, tk_ba_ref, tk_k2_ref, tk_b2_ref,
    d_wa_ref, d_ba_ref, d_w2_ref, d_b2_ref,
    o_ref,
):
    f32 = jnp.float32
    z = x_ref[0]                                          # (C*T, D)

    # ---- ch_mixing1: mix channels (row-major part of the composite rows) ---
    # ka = [k1 ; kj] stacked on rows -> one matmul covers net-layer-1 + jump.
    h_ch = ch_k2_ref.shape[1]                             # Hc*T (static)
    t = jnp.dot(ch_ka_ref[...], z, preferred_element_type=f32) + ch_ba_ref[...]
    h = _gelu_exact(t[:h_ch])                             # (Hc*T, D)
    z = (jnp.dot(ch_k2_ref[...], h, preferred_element_type=f32)
         + ch_b2_ref[...] + t[h_ch:])                     # (Co*T, D)

    # ---- patch_num_mix / patch_size_mix: mix tokens (row-minor part) -------
    h_tk = tk_k2_ref.shape[1]                             # Co*(Hn+Hp) (static)
    t = jnp.dot(tk_ka_ref[...], z, preferred_element_type=f32) + tk_ba_ref[...]
    h = _gelu_exact(t[:h_tk])
    z = (jnp.dot(tk_k2_ref[...], h, preferred_element_type=f32)
         + tk_b2_ref[...] + t[h_tk:])                     # (Co*T, D)

    # ---- d_mixing1: mix d_model (lane dimension, right-multiply) ------------
    d_hid = d_w2_ref.shape[0]                             # D (static)
    t = jnp.dot(z, d_wa_ref[...], preferred_element_type=f32) + d_ba_ref[...]
    h = _gelu_exact(t[:, :d_hid])
    o_ref[0] = (jnp.dot(h, d_w2_ref[...], preferred_element_type=f32)
                + d_b2_ref[...] + t[:, d_hid:])           # (Co*T, D)


# ---------------------------------------------------------------------------
# Wrapper-side weight expansion (tiny XLA ops, done once per call).
# ---------------------------------------------------------------------------
def _expand_channel_block(p, t_tokens):
    """Channel-mixing MLPBlock -> left-multiply operands on (chn, token) rows."""
    eye_t = jnp.eye(t_tokens, dtype=jnp.float32)
    k1 = jnp.kron(p["w1"].T, eye_t)                       # (Hc*T, C*T)
    kj = jnp.kron(p["wj"].T, eye_t)                       # (Co*T, C*T)
    k2 = jnp.kron(p["w2"].T, eye_t)                       # (Co*T, Hc*T)
    b1 = jnp.repeat(p["b1"], t_tokens)[:, None]
    bj = jnp.repeat(p["bj"], t_tokens)[:, None]
    b2 = jnp.repeat(p["b2"], t_tokens)[:, None]
    ka = jnp.concatenate([k1, kj], axis=0)                # stacked net-1 + jump
    ba = jnp.concatenate([b1, bj], axis=0)
    return ka, ba, k2, b2


def _expand_token_block(p_num, p_size, out_chn):
    """patch_num_mix + patch_size_mix -> one block-diagonal left-multiply."""
    eye_c = jnp.eye(out_chn, dtype=jnp.float32)
    a1 = block_diag(p_num["w1"].T, p_size["w1"].T)        # (Hn+Hp, N+P)
    aj = block_diag(p_num["wj"].T, p_size["wj"].T)        # (N+P,   N+P)
    a2 = block_diag(p_num["w2"].T, p_size["w2"].T)        # (N+P,   Hn+Hp)
    k1 = jnp.kron(eye_c, a1)                              # (Co*(Hn+Hp), Co*(N+P))
    kj = jnp.kron(eye_c, aj)                              # (Co*(N+P),   Co*(N+P))
    k2 = jnp.kron(eye_c, a2)                              # (Co*(N+P),   Co*(Hn+Hp))
    b1 = jnp.tile(jnp.concatenate([p_num["b1"], p_size["b1"]]), out_chn)[:, None]
    bj = jnp.tile(jnp.concatenate([p_num["bj"], p_size["bj"]]), out_chn)[:, None]
    b2 = jnp.tile(jnp.concatenate([p_num["b2"], p_size["b2"]]), out_chn)[:, None]
    ka = jnp.concatenate([k1, kj], axis=0)                # stacked net-1 + jump
    ba = jnp.concatenate([b1, bj], axis=0)
    return ka, ba, k2, b2


def _expand_d_block(p):
    """d_model-mixing MLPBlock -> right-multiply operands (lane contraction)."""
    wa = jnp.concatenate([p["w1"], p["wj"]], axis=1)      # (D, 2D) stacked on lanes
    ba = jnp.concatenate([p["b1"], p["bj"]])[None, :]     # (1, 2D)
    return wa, ba, p["w2"], p["b2"][None, :]


# ---------------------------------------------------------------------------
# PatchMLP_layer.forward equivalent.
# ---------------------------------------------------------------------------
def patch_mlp_layer_forward(x_patch_num, x_patch_size, params):
    B, C, N, D = x_patch_num.shape
    P = x_patch_size.shape[2]
    T = N + P
    Co = params["ch"]["w2"].shape[1]

    # Layout plumbing stays in the wrapper (cheap XLA ops in HBM):
    # rows = (channel, [num tokens ; size tokens]), lanes = d_model.
    x_cat = jnp.concatenate([x_patch_num, x_patch_size], axis=2)   # (B, C, T, D)
    x_cat = x_cat.reshape(B, C * T, D).astype(jnp.float32)

    weights = (*_expand_channel_block(params["ch"], T),
               *_expand_token_block(params["pn"], params["ps"], Co),
               *_expand_d_block(params["d"]))

    in_specs = [pl.BlockSpec((1, C * T, D), lambda b: (b, 0, 0))]
    in_specs += [pl.BlockSpec(w.shape, lambda b: (0, 0)) for w in weights]

    out = pl.pallas_call(
        _patch_mlp_kernel,
        out_shape=jax.ShapeDtypeStruct((B, Co * T, D), jnp.float32),
        grid_spec=pltpu.PrefetchScalarGridSpec(
            num_scalar_prefetch=0,
            grid=(B,),
            in_specs=in_specs,
            out_specs=pl.BlockSpec((1, Co * T, D), lambda b: (b, 0, 0)),
        ),
        compiler_params=pltpu.CompilerParams(
            dimension_semantics=("parallel",)),
    )(x_cat, *weights)

    out = out.reshape(B, Co, T, D)
    return out[:, :, :N, :], out[:, :, N:, :]


# ---------------------------------------------------------------------------
# Parameter construction (PyTorch nn.Linear-style uniform init), weights
# stored as (fan_in, fan_out) == torch_weight.T.
# ---------------------------------------------------------------------------
def _init_linear(key, fan_in, fan_out):
    kw, kb = jax.random.split(key)
    bound = 1.0 / math.sqrt(fan_in)
    w = jax.random.uniform(kw, (fan_in, fan_out), jnp.float32, -bound, bound)
    b = jax.random.uniform(kb, (fan_out,), jnp.float32, -bound, bound)
    return w, b


def _init_mlp_block(key, in_f, hid_f, out_f):
    k1, k2, kj = jax.random.split(key, 3)
    w1, b1 = _init_linear(k1, in_f, hid_f)
    w2, b2 = _init_linear(k2, hid_f, out_f)
    wj, bj = _init_linear(kj, in_f, out_f)                # jump_conn='proj'
    return dict(w1=w1, b1=b1, w2=w2, b2=b2, wj=wj, bj=bj)


def init_patch_mlp_layer_params(key, *, in_len, hid_len, in_chn, hid_chn,
                                out_chn, patch_size, hid_pch, d_model):
    k_ch, k_pn, k_ps, k_d = jax.random.split(key, 4)
    return {
        "ch": _init_mlp_block(k_ch, in_chn, hid_chn, out_chn),
        "pn": _init_mlp_block(k_pn, in_len // patch_size, hid_len,
                              in_len // patch_size),
        "ps": _init_mlp_block(k_ps, patch_size, hid_pch, patch_size),
        "d":  _init_mlp_block(k_d, d_model, d_model, d_model),
    }


# ---------------------------------------------------------------------------
# Pure-JAX reference (mirrors the torch module op-for-op) for validation.
# ---------------------------------------------------------------------------
def _mlp_block_ref(x, dim, p):
    hp = jax.lax.Precision.HIGHEST
    xt = jnp.swapaxes(x, dim, -1)
    h = _gelu_exact(jnp.einsum("...i,ij->...j", xt, p["w1"], precision=hp) + p["b1"])
    net = jnp.einsum("...i,ij->...j", h, p["w2"], precision=hp) + p["b2"]
    jump = jnp.einsum("...i,ij->...j", xt, p["wj"], precision=hp) + p["bj"]
    return jnp.swapaxes(net + jump, dim, -1)


def patch_mlp_layer_ref(xn, xs, params):
    # norm=None -> Identity, drop=0.0 -> Identity.
    xn = _mlp_block_ref(xn, 1, params["ch"])
    xn = _mlp_block_ref(xn, 2, params["pn"])
    xn = _mlp_block_ref(xn, 3, params["d"])
    xs = _mlp_block_ref(xs, 1, params["ch"])
    xs = _mlp_block_ref(xs, 2, params["ps"])
    xs = _mlp_block_ref(xs, 3, params["d"])
    return xn, xs


if __name__ == "__main__":
    key = jax.random.PRNGKey(0)

    # Small demo shapes consistent with the module; d_model = 128 chosen to
    # match the TPU lane width (kernel itself is shape-generic).
    B, in_chn, out_chn, hid_chn = 2, 4, 4, 8
    in_len, patch_size = 128, 16
    hid_len, hid_pch = 16, 16
    d_model = 128
    N = in_len // patch_size            # 8 patches
    P = patch_size                      # 16

    k_num, k_size, k_par = jax.random.split(key, 3)
    x_patch_num = jax.random.normal(k_num, (B, in_chn, N, d_model), jnp.float32)
    x_patch_size = jax.random.normal(k_size, (B, in_chn, P, d_model), jnp.float32)

    params = init_patch_mlp_layer_params(
        k_par, in_len=in_len, hid_len=hid_len, in_chn=in_chn, hid_chn=hid_chn,
        out_chn=out_chn, patch_size=patch_size, hid_pch=hid_pch, d_model=d_model)

    fwd = jax.jit(patch_mlp_layer_forward)
    out_num, out_size = fwd(x_patch_num, x_patch_size, params)
    jax.block_until_ready((out_num, out_size))

    assert out_num.shape == (B, out_chn, N, d_model)
    assert out_size.shape == (B, out_chn, P, d_model)

    # Validate against the pure-JAX reference of the torch module.  Tolerance
    # is loose only to absorb possible reduced-precision MXU accumulation; a
    # layout / kron-expansion bug would produce O(1) errors.
    ref_num, ref_size = patch_mlp_layer_ref(x_patch_num, x_patch_size, params)
    assert jnp.allclose(out_num, ref_num, rtol=2e-2, atol=2e-2)
    assert jnp.allclose(out_size, ref_size, rtol=2e-2, atol=2e-2)

    print("KERNEL_OK")
</pallas_src>

<mosaic_0001>
module attributes {stable_mosaic.version = 11 : i64} {
  func.func @_patch_mlp_kernel(%arg0: i32, %arg1: memref<1x96x128xf32, #tpu.memory_space<vmem>>, %arg2: memref<288x96xf32, #tpu.memory_space<vmem>>, %arg3: memref<288x1xf32, #tpu.memory_space<vmem>>, %arg4: memref<96x192xf32, #tpu.memory_space<vmem>>, %arg5: memref<96x1xf32, #tpu.memory_space<vmem>>, %arg6: memref<224x96xf32, #tpu.memory_space<vmem>>, %arg7: memref<224x1xf32, #tpu.memory_space<vmem>>, %arg8: memref<96x128xf32, #tpu.memory_space<vmem>>, %arg9: memref<96x1xf32, #tpu.memory_space<vmem>>, %arg10: memref<128x256xf32, #tpu.memory_space<vmem>>, %arg11: memref<1x256xf32, #tpu.memory_space<vmem>>, %arg12: memref<128x128xf32, #tpu.memory_space<vmem>>, %arg13: memref<1x128xf32, #tpu.memory_space<vmem>>, %arg14: memref<1x96x128xf32, #tpu.memory_space<vmem>>) attributes {dimension_semantics = [#tpu.dimension_semantics<parallel>], iteration_bounds = array<i64: 2>, scalar_prefetch = 0 : i64, scratch_operands = 0 : i64, tpu.core_type = #tpu.core_type<tc>, window_params = [{transform_indices = @transform_0, window_bounds = array<i64: 1, 96, 128>}, {pipeline_mode = #tpu.pipeline_mode<synchronous>, transform_indices = @transform_1, window_bounds = array<i64: 288, 96>}, {pipeline_mode = #tpu.pipeline_mode<synchronous>, transform_indices = @transform_2, window_bounds = array<i64: 288, 1>}, {pipeline_mode = #tpu.pipeline_mode<synchronous>, transform_indices = @transform_3, window_bounds = array<i64: 96, 192>}, {pipeline_mode = #tpu.pipeline_mode<synchronous>, transform_indices = @transform_4, window_bounds = array<i64: 96, 1>}, {pipeline_mode = #tpu.pipeline_mode<synchronous>, transform_indices = @transform_5, window_bounds = array<i64: 224, 96>}, {pipeline_mode = #tpu.pipeline_mode<synchronous>, transform_indices = @transform_6, window_bounds = array<i64: 224, 1>}, {pipeline_mode = #tpu.pipeline_mode<synchronous>, transform_indices = @transform_7, window_bounds = array<i64: 96, 128>}, {pipeline_mode = #tpu.pipeline_mode<synchronous>, transform_indices = @transform_8, window_bounds = array<i64: 96, 1>}, {pipeline_mode = #tpu.pipeline_mode<synchronous>, transform_indices = @transform_9, window_bounds = array<i64: 128, 256>}, {pipeline_mode = #tpu.pipeline_mode<synchronous>, transform_indices = @transform_10, window_bounds = array<i64: 1, 256>}, {pipeline_mode = #tpu.pipeline_mode<synchronous>, transform_indices = @transform_11, window_bounds = array<i64: 128, 128>}, {pipeline_mode = #tpu.pipeline_mode<synchronous>, transform_indices = @transform_12, window_bounds = array<i64: 1, 128>}, {transform_indices = @transform_13, window_bounds = array<i64: 1, 96, 128>}]} {
    %c0 = arith.constant 0 : index
    %c0_0 = arith.constant 0 : index
    %c0_1 = arith.constant 0 : index
    %0 = vector.load %arg1[%c0, %c0_0, %c0_1] : memref<1x96x128xf32, #tpu.memory_space<vmem>>, vector<1x96x128xf32>
    %1 = vector.shape_cast %0 : vector<1x96x128xf32> to vector<96x128xf32>
    %c0_2 = arith.constant 0 : index
    %c0_3 = arith.constant 0 : index
    %2 = vector.load %arg2[%c0_2, %c0_3] : memref<288x96xf32, #tpu.memory_space<vmem>>, vector<288x96xf32>
    %cst = arith.constant dense<0.000000e+00> : vector<288x128xf32>
    %3 = tpu.matmul %2, %1, %cst {dimension_numbers = #tpu.dot_dimension_numbers<[1], [0], [0], [1], [0, 0, 1, 1], [], []>} : vector<288x96xf32>, vector<96x128xf32>, vector<288x128xf32> -> vector<288x128xf32>
    %c0_4 = arith.constant 0 : index
    %c0_5 = arith.constant 0 : index
    %4 = vector.load %arg3[%c0_4, %c0_5] : memref<288x1xf32, #tpu.memory_space<vmem>>, vector<288x1xf32>
    %5 = vector.broadcast %4 : vector<288x1xf32> to vector<288x128xf32>
    %6 = arith.addf %3, %5 : vector<288x128xf32>
    %7 = vector.extract_strided_slice %6 {offsets = [0, 0], sizes = [192, 128], strides = [1, 1]} : vector<288x128xf32> to vector<192x128xf32>
    %cst_6 = arith.constant 5.000000e-01 : f32
    %8 = vector.broadcast %cst_6 : f32 to vector<192x128xf32>
    %9 = arith.mulf %8, %7 : vector<192x128xf32>
    %cst_7 = arith.constant 0.707106769 : f32
    %10 = vector.broadcast %cst_7 : f32 to vector<192x128xf32>
    %11 = arith.mulf %7, %10 : vector<192x128xf32>
    %12 = math.erf %11 : vector<192x128xf32>
    %cst_8 = arith.constant 1.000000e+00 : f32
    %13 = vector.broadcast %cst_8 : f32 to vector<192x128xf32>
    %14 = arith.addf %13, %12 : vector<192x128xf32>
    %15 = arith.mulf %9, %14 : vector<192x128xf32>
    %c0_9 = arith.constant 0 : index
    %c0_10 = arith.constant 0 : index
    %16 = vector.load %arg4[%c0_9, %c0_10] : memref<96x192xf32, #tpu.memory_space<vmem>>, vector<96x192xf32>
    %cst_11 = arith.constant dense<0.000000e+00> : vector<96x128xf32>
    %17 = tpu.matmul %16, %15, %cst_11 {dimension_numbers = #tpu.dot_dimension_numbers<[1], [0], [0], [1], [0, 0, 1, 1], [], []>} : vector<96x192xf32>, vector<192x128xf32>, vector<96x128xf32> -> vector<96x128xf32>
    %c0_12 = arith.constant 0 : index
    %c0_13 = arith.constant 0 : index
    %18 = vector.load %arg5[%c0_12, %c0_13] : memref<96x1xf32, #tpu.memory_space<vmem>>, vector<96x1xf32>
    %19 = vector.broadcast %18 : vector<96x1xf32> to vector<96x128xf32>
    %20 = arith.addf %17, %19 : vector<96x128xf32>
    %21 = vector.extract_strided_slice %6 {offsets = [192, 0], sizes = [96, 128], strides = [1, 1]} : vector<288x128xf32> to vector<96x128xf32>
    %22 = arith.addf %20, %21 : vector<96x128xf32>
    %c0_14 = arith.constant 0 : index
    %c0_15 = arith.constant 0 : index
    %23 = vector.load %arg6[%c0_14, %c0_15] : memref<224x96xf32, #tpu.memory_space<vmem>>, vector<224x96xf32>
    %cst_16 = arith.constant dense<0.000000e+00> : vector<224x128xf32>
    %24 = tpu.matmul %23, %22, %cst_16 {dimension_numbers = #tpu.dot_dimension_numbers<[1], [0], [0], [1], [0, 0, 1, 1], [], []>} : vector<224x96xf32>, vector<96x128xf32>, vector<224x128xf32> -> vector<224x128xf32>
    %c0_17 = arith.constant 0 : index
    %c0_18 = arith.constant 0 : index
    %25 = vector.load %arg7[%c0_17, %c0_18] : memref<224x1xf32, #tpu.memory_space<vmem>>, vector<224x1xf32>
    %26 = vector.broadcast %25 : vector<224x1xf32> to vector<224x128xf32>
    %27 = arith.addf %24, %26 : vector<224x128xf32>
    %28 = vector.extract_strided_slice %27 {offsets = [0, 0], sizes = [128, 128], strides = [1, 1]} : vector<224x128xf32> to vector<128x128xf32>
    %cst_19 = arith.constant 5.000000e-01 : f32
    %29 = vector.broadcast %cst_19 : f32 to vector<128x128xf32>
    %30 = arith.mulf %29, %28 : vector<128x128xf32>
    %cst_20 = arith.constant 0.707106769 : f32
    %31 = vector.broadcast %cst_20 : f32 to vector<128x128xf32>
    %32 = arith.mulf %28, %31 : vector<128x128xf32>
    %33 = math.erf %32 : vector<128x128xf32>
    %cst_21 = arith.constant 1.000000e+00 : f32
    %34 = vector.broadcast %cst_21 : f32 to vector<128x128xf32>
    %35 = arith.addf %34, %33 : vector<128x128xf32>
    %36 = arith.mulf %30, %35 : vector<128x128xf32>
    %c0_22 = arith.constant 0 : index
    %c0_23 = arith.constant 0 : index
    %37 = vector.load %arg8[%c0_22, %c0_23] : memref<96x128xf32, #tpu.memory_space<vmem>>, vector<96x128xf32>
    %cst_24 = arith.constant dense<0.000000e+00> : vector<96x128xf32>
    %38 = tpu.matmul %37, %36, %cst_24 {dimension_numbers = #tpu.dot_dimension_numbers<[1], [0], [0], [1], [0, 0, 1, 1], [], []>} : vector<96x128xf32>, vector<128x128xf32>, vector<96x128xf32> -> vector<96x128xf32>
    %c0_25 = arith.constant 0 : index
    %c0_26 = arith.constant 0 : index
    %39 = vector.load %arg9[%c0_25, %c0_26] : memref<96x1xf32, #tpu.memory_space<vmem>>, vector<96x1xf32>
    %40 = vector.broadcast %39 : vector<96x1xf32> to vector<96x128xf32>
    %41 = arith.addf %38, %40 : vector<96x128xf32>
    %42 = vector.extract_strided_slice %27 {offsets = [128, 0], sizes = [96, 128], strides = [1, 1]} : vector<224x128xf32> to vector<96x128xf32>
    %43 = arith.addf %41, %42 : vector<96x128xf32>
    %c0_27 = arith.constant 0 : index
    %c0_28 = arith.constant 0 : index
    %44 = vector.load %arg10[%c0_27, %c0_28] : memref<128x256xf32, #tpu.memory_space<vmem>>, vector<128x256xf32>
    %cst_29 = arith.constant dense<0.000000e+00> : vector<96x256xf32>
    %45 = tpu.matmul %43, %44, %cst_29 {dimension_numbers = #tpu.dot_dimension_numbers<[1], [0], [0], [1], [0, 0, 1, 1], [], []>} : vector<96x128xf32>, vector<128x256xf32>, vector<96x256xf32> -> vector<96x256xf32>
    %c0_30 = arith.constant 0 : index
    %c0_31 = arith.constant 0 : index
    %46 = vector.load %arg11[%c0_30, %c0_31] : memref<1x256xf32, #tpu.memory_space<vmem>>, vector<1x256xf32>
    %47 = vector.broadcast %46 : vector<1x256xf32> to vector<96x256xf32>
    %48 = arith.addf %45, %47 : vector<96x256xf32>
    %49 = vector.extract_strided_slice %48 {offsets = [0, 0], sizes = [96, 128], strides = [1, 1]} : vector<96x256xf32> to vector<96x128xf32>
    %cst_32 = arith.constant 5.000000e-01 : f32
    %50 = vector.broadcast %cst_32 : f32 to vector<96x128xf32>
    %51 = arith.mulf %50, %49 : vector<96x128xf32>
    %cst_33 = arith.constant 0.707106769 : f32
    %52 = vector.broadcast %cst_33 : f32 to vector<96x128xf32>
    %53 = arith.mulf %49, %52 : vector<96x128xf32>
    %54 = math.erf %53 : vector<96x128xf32>
    %cst_34 = arith.constant 1.000000e+00 : f32
    %55 = vector.broadcast %cst_34 : f32 to vector<96x128xf32>
    %56 = arith.addf %55, %54 : vector<96x128xf32>
    %57 = arith.mulf %51, %56 : vector<96x128xf32>
    %c0_35 = arith.constant 0 : index
    %c0_36 = arith.constant 0 : index
    %58 = vector.load %arg12[%c0_35, %c0_36] : memref<128x128xf32, #tpu.memory_space<vmem>>, vector<128x128xf32>
    %cst_37 = arith.constant dense<0.000000e+00> : vector<96x128xf32>
    %59 = tpu.matmul %57, %58, %cst_37 {dimension_numbers = #tpu.dot_dimension_numbers<[1], [0], [0], [1], [0, 0, 1, 1], [], []>} : vector<96x128xf32>, vector<128x128xf32>, vector<96x128xf32> -> vector<96x128xf32>
    %c0_38 = arith.constant 0 : index
    %c0_39 = arith.constant 0 : index
    %60 = vector.load %arg13[%c0_38, %c0_39] : memref<1x128xf32, #tpu.memory_space<vmem>>, vector<1x128xf32>
    %61 = vector.broadcast %60 : vector<1x128xf32> to vector<96x128xf32>
    %62 = arith.addf %59, %61 : vector<96x128xf32>
    %63 = vector.extract_strided_slice %48 {offsets = [0, 128], sizes = [96, 128], strides = [1, 1]} : vector<96x256xf32> to vector<96x128xf32>
    %64 = arith.addf %62, %63 : vector<96x128xf32>
    %c0_40 = arith.constant 0 : index
    %c0_41 = arith.constant 0 : index
    %c0_42 = arith.constant 0 : index
    %65 = vector.load %arg14[%c0_40, %c0_41, %c0_42] : memref<1x96x128xf32, #tpu.memory_space<vmem>>, vector<1x96x128xf32>
    %66 = vector.shape_cast %65 : vector<1x96x128xf32> to vector<96x128xf32>
    %67 = vector.shape_cast %64 : vector<96x128xf32> to vector<1x96x128xf32>
    tpu.vector_store %arg14[%c0_40, %c0_41, %c0_42], %67 {strides = array<i32>} : memref<1x96x128xf32, #tpu.memory_space<vmem>>, vector<1x96x128xf32>,
    return
  }
  func.func @transform_0(%arg0: i32) -> (i32, i32, i32) {
    %c0_i32 = arith.constant 0 : i32
    %c0_i32_0 = arith.constant 0 : i32
    %c0_i32_1 = arith.constant 0 : i32
    return %arg0, %c0_i32, %c0_i32_0 : i32, i32, i32
  }
  func.func @transform_1(%arg0: i32) -> (i32, i32) {
    %c0_i32 = arith.constant 0 : i32
    %c0_i32_0 = arith.constant 0 : i32
    %c0_i32_1 = arith.constant 0 : i32
    return %c0_i32, %c0_i32_0 : i32, i32
  }
  func.func @transform_2(%arg0: i32) -> (i32, i32) {
    %c0_i32 = arith.constant 0 : i32
    %c0_i32_0 = arith.constant 0 : i32
    %c0_i32_1 = arith.constant 0 : i32
    return %c0_i32, %c0_i32_0 : i32, i32
  }
  func.func @transform_3(%arg0: i32) -> (i32, i32) {
    %c0_i32 = arith.constant 0 : i32
    %c0_i32_0 = arith.constant 0 : i32
    %c0_i32_1 = arith.constant 0 : i32
    return %c0_i32, %c0_i32_0 : i32, i32
  }
  func.func @transform_4(%arg0: i32) -> (i32, i32) {
    %c0_i32 = arith.constant 0 : i32
    %c0_i32_0 = arith.constant 0 : i32
    %c0_i32_1 = arith.constant 0 : i32
    return %c0_i32, %c0_i32_0 : i32, i32
  }
  func.func @transform_5(%arg0: i32) -> (i32, i32) {
    %c0_i32 = arith.constant 0 : i32
    %c0_i32_0 = arith.constant 0 : i32
    %c0_i32_1 = arith.constant 0 : i32
    return %c0_i32, %c0_i32_0 : i32, i32
  }
  func.func @transform_6(%arg0: i32) -> (i32, i32) {
    %c0_i32 = arith.constant 0 : i32
    %c0_i32_0 = arith.constant 0 : i32
    %c0_i32_1 = arith.constant 0 : i32
    return %c0_i32, %c0_i32_0 : i32, i32
  }
  func.func @transform_7(%arg0: i32) -> (i32, i32) {
    %c0_i32 = arith.constant 0 : i32
    %c0_i32_0 = arith.constant 0 : i32
    %c0_i32_1 = arith.constant 0 : i32
    return %c0_i32, %c0_i32_0 : i32, i32
  }
  func.func @transform_8(%arg0: i32) -> (i32, i32) {
    %c0_i32 = arith.constant 0 : i32
    %c0_i32_0 = arith.constant 0 : i32
    %c0_i32_1 = arith.constant 0 : i32
    return %c0_i32, %c0_i32_0 : i32, i32
  }
  func.func @transform_9(%arg0: i32) -> (i32, i32) {
    %c0_i32 = arith.constant 0 : i32
    %c0_i32_0 = arith.constant 0 : i32
    %c0_i32_1 = arith.constant 0 : i32
    return %c0_i32, %c0_i32_0 : i32, i32
  }
  func.func @transform_10(%arg0: i32) -> (i32, i32) {
    %c0_i32 = arith.constant 0 : i32
    %c0_i32_0 = arith.constant 0 : i32
    %c0_i32_1 = arith.constant 0 : i32
    return %c0_i32, %c0_i32_0 : i32, i32
  }
  func.func @transform_11(%arg0: i32) -> (i32, i32) {
    %c0_i32 = arith.constant 0 : i32
    %c0_i32_0 = arith.constant 0 : i32
    %c0_i32_1 = arith.constant 0 : i32
    return %c0_i32, %c0_i32_0 : i32, i32
  }
  func.func @transform_12(%arg0: i32) -> (i32, i32) {
    %c0_i32 = arith.constant 0 : i32
    %c0_i32_0 = arith.constant 0 : i32
    %c0_i32_1 = arith.constant 0 : i32
    return %c0_i32, %c0_i32_0 : i32, i32
  }
  func.func @transform_13(%arg0: i32) -> (i32, i32, i32) {
    %c0_i32 = arith.constant 0 : i32
    %c0_i32_0 = arith.constant 0 : i32
    %c0_i32_1 = arith.constant 0 : i32
    return %arg0, %c0_i32, %c0_i32_0 : i32, i32, i32
  }
}

</mosaic_0001>

<bundles_post_ra>
// kernel: tile.18
= control target key start
LH: loop header
LB: loop body
LE: loop exit
PB: predicated region body
PF: predicated region fallthrough
CT: control target
= control target key end

     0   :  { %s22_s0 = inlined_call_operand.vmem [shape: f32[32], index: 0, kind: input, shape index: {}]   ;;  %s23_s1 = inlined_call_operand.vmem [shape: f32[4,32], index: 1, kind: output, shape index: {}]  }
   0x1   :  { %v4_v0 = vld [vmem:[%s22_s0] ss:$0 sm:$0xff] }
   0x2   :  { %5 = vst [vmem:[%s23_s1] sm:$0xf] %v4_v0 }

// kernel: tile.19
= control target key start
LH: loop header
LB: loop body
LE: loop exit
PB: predicated region body
PF: predicated region fallthrough
CT: control target
= control target key end

     0   :  { %vm7_vm0 = vcmask 261120   ;;  %s37_s8 = smov 32   ;;  %s38_s9 = smov 64   ;;  %vm13_vm1 = vcmask 1048320   ;;  %vm19_vm2 = vcmask 785920   ;;  %vm25_vm3 = vcmask 523520   ;;  %s55_s0 = inlined_call_operand.vmem [shape: f32[4,32], index: 0, kind: input, shape index: {}]   ;;  %s56_s1 = inlined_call_operand.vmem [shape: f32[128,1], index: 1, kind: output, shape index: {}]  }
   0x1   :  { %v4_v0 = vld [vmem:[%s55_s0] sm:$0xf]  ;;  %s36_s0 = smov 96  }
   0x2   :  { %5 = vst [vmem:[#allocation1] sm:$0xf] %v4_v0 }
   0x9   :  { %v10_v1 = vld [vmem:[#allocation1 + $0x3] sm:$0x1]   ;;  %v22_v2 = vld [vmem:[#allocation1 + $0x1] sm:$0x1]   ;;  %v6_v3 = vld [vmem:[#allocation1] sm:$0x1]  }
   0xa   :  { %11 = vrot.lane.b32.xlu0 %v10_v1, %s36_s0  ;;  %23 = vrot.lane.b32.xlu1 %v22_v2, %s37_s8  ;;  %v16_v4 = vld [vmem:[#allocation1 + $0x2] sm:$0x1]   ;;  %8 = vst.msk [vmem:[#allocation0] sm:$0x1] %vm7_vm0, %v6_v3  }
   0xe   :  { %17 = vrot.lane.b32.xlu0 %v16_v4, %s38_s9 }
  0x7c   :  { %v12_v5 = vpop.permute.xlu0 %11   ;;  %v24_v6 = vpop.permute.xlu1 %23  }
  0x7d   :  { %14 = vst.msk [vmem:[#allocation0] sm:$0x1] %vm13_vm1, %v12_v5  }
  0x80   :  { %v18_v7 = vpop.permute.xlu0 %17  }
  0x81   :  { %20 = vst.msk [vmem:[#allocation0] sm:$0x1] %vm19_vm2, %v18_v7  }
  0x82   :  { %26 = vst.msk [vmem:[#allocation0] sm:$0x1] %vm25_vm3, %v24_v6  }
  0x89   :  { %v30_v8 = vld [vmem:[#allocation0] sm:$0x1] }
  0x8a   :  { %32 = vst [vmem:[%s56_s1] sm:$0x1] %v30_v8 }

// kernel: tile.23
= control target key start
LH: loop header
LB: loop body
LE: loop exit
PB: predicated region body
PF: predicated region fallthrough
CT: control target
= control target key end

     0   :  { %s22_s0 = inlined_call_operand.vmem [shape: f32[24], index: 0, kind: input, shape index: {}]   ;;  %s23_s1 = inlined_call_operand.vmem [shape: f32[4,24], index: 1, kind: output, shape index: {}]  }
   0x1   :  { %v4_v0 = vld [vmem:[%s22_s0] ss:$0 sm:$0xff] }
   0x2   :  { %5 = vst [vmem:[%s23_s1] sm:$0xf] %v4_v0 }

// kernel: tile.0
= control target key start
LH: loop header
LB: loop body
LE: loop exit
PB: predicated region body
PF: predicated region fallthrough
CT: control target
= control target key end

     0   :  { %s263_s8 = smov 125   ;;  %s264_s9 = smov 126   ;;  %vm7_vm0 = vcmask 7168   ;;  %s486_s0 = inlined_call_operand.vmem [shape: f32[4,24], index: 0, kind: input, shape index: {}]   ;;  %s487_s1 = inlined_call_operand.vmem [shape: f32[96,1], index: 1, kind: output, shape index: {}]  }
   0x1   :  { %v4_v0 = vld [vmem:[%s486_s0] sm:$0xf]  ;;  %s262_s0 = smov 127   ;;  %s265_s10 = smov 124  }
   0x2   :  { %5 = vst [vmem:[#allocation0] sm:$0xf] %v4_v0  ;;  %s266_s11 = smov 123   ;;  %s267_s12 = smov 122  }
   0x3   :  { %s268_s13 = smov 121   ;;  %s269_s14 = smov 120  }
   0x4   :  { %s270_s15 = smov 119   ;;  %s271_s16 = smov 118  }
   0x5   :  { %s272_s17 = smov 117   ;;  %s273_s18 = smov 116  }
   0x6   :  { %s274_s19 = smov 115   ;;  %s275_s20 = smov 114  }
   0x7   :  { %s276_s21 = smov 113   ;;  %s277_s22 = smov 112  }
   0x8   :  { %s278_s25 = smov 111   ;;  %s279_s26 = smov 110  }
   0x9   :  { %v9_v1 = vld.sshfl [vmem:[#allocation0] sm:$0xff pattern:$0x11111230]   ;;  %s280_s27 = smov 109   ;;  %s281_s28 = smov 108  }
   0xa   :  { %10 = vrot.lane.b32.xlu0 %v9_v1, %s262_s0  ;;  %26 = vrot.lane.b32.xlu1 %v9_v1, %s263_s8  ;;  %v65_v2 = vld.sshfl [vmem:[#allocation0] sm:$0xff pattern:$0x22222301]   ;;  %s282_s29 = smov 107   ;;  %s283_s30 = smov 106  }
   0xb   :  { %v129_v3 = vld.sshfl [vmem:[#allocation0] sm:$0xff pattern:$0x33333012]   ;;  %s284_s2 = smov 105  }
   0xc   :  { %v6_v4 = vld [vmem:[#allocation0] sm:$0xf]  }
   0xd   :  { %8 = vst.msk [vmem:[%s487_s1] ss:$24 sm:$0xf] %vm7_vm0, %v6_v4  }
   0xe   :  { %18 = vrot.lane.b32.xlu0 %v9_v1, %s264_s9  ;;  %34 = vrot.lane.b32.xlu1 %v9_v1, %s265_s10 }
  0x12   :  { %42 = vrot.lane.b32.xlu0 %v9_v1, %s266_s11  ;;  %50 = vrot.lane.b32.xlu1 %v9_v1, %s267_s12 }
  0x16   :  { %58 = vrot.lane.b32.xlu0 %v9_v1, %s268_s13  ;;  %66 = vrot.lane.b32.xlu1 %v65_v2, %s269_s14 }
  0x1a   :  { %74 = vrot.lane.b32.xlu0 %v65_v2, %s270_s15  ;;  %82 = vrot.lane.b32.xlu1 %v65_v2, %s271_s16 }
  0x1e   :  { %90 = vrot.lane.b32.xlu0 %v65_v2, %s272_s17  ;;  %98 = vrot.lane.b32.xlu1 %v65_v2, %s273_s18 }
  0x22   :  { %106 = vrot.lane.b32.xlu0 %v65_v2, %s274_s19  ;;  %114 = vrot.lane.b32.xlu1 %v65_v2, %s275_s20 }
  0x26   :  { %122 = vrot.lane.b32.xlu0 %v65_v2, %s276_s21  ;;  %130 = vrot.lane.b32.xlu1 %v129_v3, %s277_s22 }
  0x2a   :  { %138 = vrot.lane.b32.xlu0 %v129_v3, %s278_s25  ;;  %146 = vrot.lane.b32.xlu1 %v129_v3, %s279_s26 }
  0x2e   :  { %154 = vrot.lane.b32.xlu0 %v129_v3, %s280_s27  ;;  %162 = vrot.lane.b32.xlu1 %v129_v3, %s281_s28 }
  0x32   :  { %170 = vrot.lane.b32.xlu0 %v129_v3, %s282_s29  ;;  %178 = vrot.lane.b32.xlu1 %v129_v3, %s283_s30 }
  0x36   :  { %186 = vrot.lane.b32.xlu0 %v129_v3, %s284_s2 }
  0x7c   :  { %v11_v5 = vpop.permute.xlu0 %10   ;;  %v27_v6 = vpop.permute.xlu1 %26  }
  0x7d   :  { %193 = vst.msk [vmem:[%s487_s1 + $0x1] ss:$72 sm:$0x3] %vm7_vm0, %v11_v5   ;;  %194 = vst.msk [vmem:[%s487_s1 + $0x61] ss:$-24 sm:$0xc] %vm7_vm0, %v11_v5  }
  0x7e   :  { %197 = vst.msk [vmem:[%s487_s1 + $0x3] ss:$72 sm:$0x3] %vm7_vm0, %v27_v6   ;;  %198 = vst.msk [vmem:[%s487_s1 + $0x63] ss:$-24 sm:$0xc] %vm7_vm0, %v27_v6  }
  0x80   :  { %v19_v7 = vpop.permute.xlu0 %18   ;;  %v35_v8 = vpop.permute.xlu1 %34  }
  0x81   :  { %195 = vst.msk [vmem:[%s487_s1 + $0x2] ss:$72 sm:$0x3] %vm7_vm0, %v19_v7   ;;  %196 = vst.msk [vmem:[%s487_s1 + $0x62] ss:$-24 sm:$0xc] %vm7_vm0, %v19_v7  }
  0x82   :  { %199 = vst.msk [vmem:[%s487_s1 + $0x4] ss:$72 sm:$0x3] %vm7_vm0, %v35_v8   ;;  %200 = vst.msk [vmem:[%s487_s1 + $0x64] ss:$-24 sm:$0xc] %vm7_vm0, %v35_v8  }
  0x84   :  { %v43_v9 = vpop.permute.xlu0 %42   ;;  %v51_v10 = vpop.permute.xlu1 %50  }
  0x85   :  { %201 = vst.msk [vmem:[%s487_s1 + $0x5] ss:$72 sm:$0x3] %vm7_vm0, %v43_v9   ;;  %202 = vst.msk [vmem:[%s487_s1 + $0x65] ss:$-24 sm:$0xc] %vm7_vm0, %v43_v9  }
  0x86   :  { %203 = vst.msk [vmem:[%s487_s1 + $0x6] ss:$72 sm:$0x3] %vm7_vm0, %v51_v10   ;;  %204 = vst.msk [vmem:[%s487_s1 + $0x66] ss:$-24 sm:$0xc] %vm7_vm0, %v51_v10  }
  0x88   :  { %v59_v11 = vpop.permute.xlu0 %58   ;;  %v67_v12 = vpop.permute.xlu1 %66  }
  0x89   :  { %205 = vst.msk [vmem:[%s487_s1 + $0x7] ss:$72 sm:$0x3] %vm7_vm0, %v59_v11   ;;  %206 = vst.msk [vmem:[%s487_s1 + $0x67] ss:$-24 sm:$0xc] %vm7_vm0, %v59_v11  }
  0x8a   :  { %207 = vst.msk [vmem:[%s487_s1 + $0x20] ss:$-24 sm:$0x3] %vm7_vm0, %v67_v12   ;;  %208 = vst.msk [vmem:[%s487_s1 + $0x80] ss:$-24 sm:$0xc] %vm7_vm0, %v67_v12  }
  0x8c   :  { %v75_v13 = vpop.permute.xlu0 %74   ;;  %v83_v14 = vpop.permute.xlu1 %82  }
  0x8d   :  { %209 = vst.msk [vmem:[%s487_s1 + $0x21] ss:$-24 sm:$0x3] %vm7_vm0, %v75_v13   ;;  %210 = vst.msk [vmem:[%s487_s1 + $0x81] ss:$-24 sm:$0xc] %vm7_vm0, %v75_v13  }
  0x8e   :  { %211 = vst.msk [vmem:[%s487_s1 + $0x22] ss:$-24 sm:$0x3] %vm7_vm0, %v83_v14   ;;  %212 = vst.msk [vmem:[%s487_s1 + $0x82] ss:$-24 sm:$0xc] %vm7_vm0, %v83_v14  }
  0x90   :  { %v91_v15 = vpop.permute.xlu0 %90   ;;  %v99_v16 = vpop.permute.xlu1 %98  }
  0x91   :  { %213 = vst.msk [vmem:[%s487_s1 + $0x23] ss:$-24 sm:$0x3] %vm7_vm0, %v91_v15   ;;  %214 = vst.msk [vmem:[%s487_s1 + $0x83] ss:$-24 sm:$0xc] %vm7_vm0, %v91_v15  }
  0x92   :  { %215 = vst.msk [vmem:[%s487_s1 + $0x24] ss:$-24 sm:$0x3] %vm7_vm0, %v99_v16   ;;  %216 = vst.msk [vmem:[%s487_s1 + $0x84] ss:$-24 sm:$0xc] %vm7_vm0, %v99_v16  }
  0x94   :  { %v107_v17 = vpop.permute.xlu0 %106   ;;  %v115_v18 = vpop.permute.xlu1 %114  }
  0x95   :  { %217 = vst.msk [vmem:[%s487_s1 + $0x25] ss:$-24 sm:$0x3] %vm7_vm0, %v107_v17   ;;  %218 = vst.msk [vmem:[%s487_s1 + $0x85] ss:$-24 sm:$0xc] %vm7_vm0, %v107_v17  }
  0x96   :  { %219 = vst.msk [vmem:[%s487_s1 + $0x26] ss:$-24 sm:$0x3] %vm7_vm0, %v115_v18   ;;  %220 = vst.msk [vmem:[%s487_s1 + $0x86] ss:$-24 sm:$0xc] %vm7_vm0, %v115_v18  }
  0x98   :  { %v123_v19 = vpop.permute.xlu0 %122   ;;  %v131_v20 = vpop.permute.xlu1 %130  }
  0x99   :  { %221 = vst.msk [vmem:[%s487_s1 + $0x27] ss:$-24 sm:$0x3] %vm7_vm0, %v123_v19   ;;  %222 = vst.msk [vmem:[%s487_s1 + $0x87] ss:$-24 sm:$0xc] %vm7_vm0, %v123_v19  }
  0x9a   :  { %223 = vst.msk [vmem:[%s487_s1 + $0x40] ss:$-24 sm:$0x7] %vm7_vm0, %v131_v20   ;;  %224 = vst.msk [vmem:[%s487_s1 + $0x55] sm:$0x8] %vm7_vm0, %v131_v20  }
  0x9c   :  { %v139_v21 = vpop.permute.xlu0 %138   ;;  %v147_v22 = vpop.permute.xlu1 %146  }
  0x9d   :  { %225 = vst.msk [vmem:[%s487_s1 + $0x41] ss:$-24 sm:$0x7] %vm7_vm0, %v139_v21   ;;  %226 = vst.msk [vmem:[%s487_s1 + $0x56] sm:$0x8] %vm7_vm0, %v139_v21  }
  0x9e   :  { %227 = vst.msk [vmem:[%s487_s1 + $0x42] ss:$-24 sm:$0x7] %vm7_vm0, %v147_v22   ;;  %228 = vst.msk [vmem:[%s487_s1 + $0x57] sm:$0x8] %vm7_vm0, %v147_v22  }
  0xa0   :  { %v155_v23 = vpop.permute.xlu0 %154   ;;  %v163_v24 = vpop.permute.xlu1 %162  }
  0xa1   :  { %229 = vst.msk [vmem:[%s487_s1 + $0x43] ss:$-24 sm:$0x7] %vm7_vm0, %v155_v23   ;;  %230 = vst.msk [vmem:[%s487_s1 + $0x58] sm:$0x8] %vm7_vm0, %v155_v23  }
  0xa2   :  { %231 = vst.msk [vmem:[%s487_s1 + $0x44] ss:$-24 sm:$0x7] %vm7_vm0, %v163_v24   ;;  %232 = vst.msk [vmem:[%s487_s1 + $0x59] sm:$0x8] %vm7_vm0, %v163_v24  }
  0xa4   :  { %v171_v25 = vpop.permute.xlu0 %170   ;;  %v179_v26 = vpop.permute.xlu1 %178  }
  0xa5   :  { %233 = vst.msk [vmem:[%s487_s1 + $0x45] ss:$-24 sm:$0x7] %vm7_vm0, %v171_v25   ;;  %234 = vst.msk [vmem:[%s487_s1 + $0x5a] sm:$0x8] %vm7_vm0, %v171_v25  }
  0xa6   :  { %235 = vst.msk [vmem:[%s487_s1 + $0x46] ss:$-24 sm:$0x7] %vm7_vm0, %v179_v26   ;;  %236 = vst.msk [vmem:[%s487_s1 + $0x5b] sm:$0x8] %vm7_vm0, %v179_v26  }
  0xa8   :  { %v187_v27 = vpop.permute.xlu0 %186  }
  0xa9   :  { %237 = vst.msk [vmem:[%s487_s1 + $0x47] ss:$-24 sm:$0x7] %vm7_vm0, %v187_v27   ;;  %238 = vst.msk [vmem:[%s487_s1 + $0x5c] sm:$0x8] %vm7_vm0, %v187_v27  }

// kernel: patch_mlp_layer_forward.1
= control target key start
LH: loop header
LB: loop body
LE: loop exit
PB: predicated region body
PF: predicated region fallthrough
CT: control target
= control target key end

     0   :  { %s3592_s25 = smov 0   ;;  %s4632_s0 = inlined_call_operand.vmem [shape: f32[2,96,128], index: 0, kind: input, shape index: {}]   ;;  %s4633_s1 = inlined_call_operand.vmem [shape: f32[288,96], index: 1, kind: input, shape index: {}]   ;;  %s4634_s2 = inlined_call_operand.vmem [shape: f32[288,1], index: 2, kind: input, shape index: {}]   ;;  %s4635_s3 = inlined_call_operand.vmem [shape: f32[96,192], index: 3, kind: input, shape index: {}]   ;;  %s4636_s4 = inlined_call_operand.vmem [shape: f32[96,1], index: 4, kind: input, shape index: {}]   ;;  %s4637_s5 = inlined_call_operand.vmem [shape: f32[224,96], index: 5, kind: input, shape index: {}]   ;;  %s4638_s6 = inlined_call_operand.vmem [shape: f32[224,1], index: 6, kind: input, shape index: {}]   ;;  %s4639_s7 = inlined_call_operand.vmem [shape: f32[96,128], index: 7, kind: input, shape index: {}]   ;;  %s4640_s8 = inlined_call_operand.vmem [shape: f32[96,1], index: 8, kind: input, shape index: {}]   ;;  %s4641_s9 = inlined_call_operand.vmem [shape: f32[128,256], index: 9, kind: input, shape index: {}]   ;;  %s4642_s10 = inlined_call_operand.vmem [shape: f32[1,256], index: 10, kind: input, shape index: {}]   ;;  %s4643_s11 = inlined_call_operand.vmem [shape: f32[128,128], index: 11, kind: input, shape index: {}]   ;;  %s4644_s12 = inlined_call_operand.vmem [shape: f32[1,128], index: 12, kind: input, shape index: {}]   ;;  %s4645_s13 = inlined_call_operand.vmem [shape: f32[2,96,128], index: 13, kind: output, shape index: {}]  }
   0x1 LB: > { %s2703_s26 = sadd.s32 4294967295, %s3517_s25   ;;  %p2707_p0 = scmp.ge.s32.totalorder %s3517_s25, 1  ;;  %s3517_s25 = sphi %s3592_s25, %s23_s25  }
   0x2   : > { %p387_p1 = scmp.lt.s32.totalorder %s3517_s25, 3 }
   0x4   : > { %p388_p2 = pnand %p2707_p0, %p387_p1 }
   0x5   : > { %v491_v0 = vld [vmem:[%s4634_s2 + $0x10] sm:$0xff] (!%p388_p2)  ;;  %v489_v1 = vld [vmem:[%s4634_s2] sm:$0xff] (!%p388_p2)  ;;  %p431_p3 = scmp.lt.s32.totalorder (!%p388_p2), %s2703_s26, 1  ;;  %v3519_v2 = vmov (!%p388_p2), 0   ;;  %v492_v3 = vld [vmem:[%s4634_s2 + $0x18] sm:$0xff] (!%p388_p2)  ;;  %vm705_vm0 = vcmask (!%p388_p2), 785408  }
   0x6   : > { %391 = sbr.rel (%p388_p2) target bundleno = 1565 (0x61d), region = 72  ;;  %3406 = vset.pattern.permute.xlu1 (!%p388_p2), %v3519_v2  ;;  %3405 = vset.pattern.permute.xlu0 (!%p388_p2), %v3519_v2  ;;  %v490_v4 = vld [vmem:[%s4634_s2 + $0x8] sm:$0xff] (!%p388_p2)  ;;  %v453_v5 = vld [vmem:[%s4633_s1] sm:$0xff] (!%p388_p2)  ;;  %v496_v16 = vld [vmem:[%s4634_s2 + $0x38] sm:$0xff] (!%p388_p2)  ;;  %vm1275_vm1 = vcmask (!%p388_p2), 523264  }
   0x7   : > { %537 = vperm.xlu1 (!%p388_p2), %3406, %v491_v0   ;;  %527 = vperm.xlu0 (!%p388_p2), %3405, %v489_v1   ;;  %v494_v6 = vld [vmem:[%s4634_s2 + $0x28] sm:$0xff] (!%p388_p2)  ;;  %v493_v7 = vld [vmem:[%s4634_s2 + $0x20] sm:$0xff] (!%p388_p2)  ;;  %v495_v17 = vld [vmem:[%s4634_s2 + $0x30] sm:$0xff] (!%p388_p2) }
   0x8   : > { %2957 = vmatprep.mubr.msk.f32.mxu0 (!%p388_p2), %vm705_vm0, %v453_v5  ;;  %v498_v21 = vld [vmem:[%s4634_s2 + $0x48] sm:$0xff] (!%p388_p2)  ;;  %v497_v22 = vld [vmem:[%s4634_s2 + $0x40] sm:$0xff] (!%p388_p2)  ;;  %v500_v26 = vld [vmem:[%s4634_s2 + $0x58] sm:$0xff] (!%p388_p2) }
   0x9   : > { %v499_v27 = vld [vmem:[%s4634_s2 + $0x50] sm:$0xff] (!%p388_p2)  ;;  %v502_v31 = vld [vmem:[%s4634_s2 + $0x68] sm:$0xff] (!%p388_p2)  ;;  %v501_v32 = vld [vmem:[%s4634_s2 + $0x60] sm:$0xff] (!%p388_p2) }
   0xa   : > { %v504_v34 = vld [vmem:[%s4634_s2 + $0x78] sm:$0xff] (!%p388_p2)  ;;  %v503_v35 = vld [vmem:[%s4634_s2 + $0x70] sm:$0xff] (!%p388_p2)  ;;  %v506_v36 = vld [vmem:[%s4634_s2 + $0x88] sm:$0xff] (!%p388_p2) }
   0xb   : > { %542 = vperm.xlu1 (!%p388_p2), %3406, %v492_v3   ;;  %532 = vperm.xlu0 (!%p388_p2), %3405, %v490_v4   ;;  %v505_v37 = vld [vmem:[%s4634_s2 + $0x80] sm:$0xff] (!%p388_p2)  ;;  %v454_v38 = vld [vmem:[%s4633_s1 + $0x8] sm:$0xff] (!%p388_p2)  ;;  %v455_v39 = vld [vmem:[%s4633_s1 + $0x10] sm:$0xff] (!%p388_p2) }
   0xc   : > { %v508_v40 = vld [vmem:[%s4634_s2 + $0x98] sm:$0xff] (!%p388_p2)  ;;  %v507_v41 = vld [vmem:[%s4634_s2 + $0x90] sm:$0xff] (!%p388_p2)  ;;  %v457_v43 = vld [vmem:[%s4633_s1 + $0x20] sm:$0xff] (!%p388_p2) }
   0xd   : > { %s4647_s26 = smov (!%p431_p3, %s2703_s26), 1  ;;  %v456_v42 = vld [vmem:[%s4633_s1 + $0x18] sm:$0xff]  ;;  %v510_v44 = vld [vmem:[%s4634_s2 + $0xa8] sm:$0xff]  ;;  %v509_v45 = vld [vmem:[%s4634_s2 + $0xa0] sm:$0xff] }
   0xe   : > { %s3393_s18 = smul.u32 96, %s4647_s26  ;;  %v458_v46 = vld [vmem:[%s4633_s1 + $0x28] sm:$0xff]  ;;  %v459_v47 = vld [vmem:[%s4633_s1 + $0x30] sm:$0xff]  ;;  %v512_v48 = vld [vmem:[%s4634_s2 + $0xb8] sm:$0xff] }
   0xf   : > { %552 = vperm.xlu1 %3406, %v494_v6   ;;  %547 = vperm.xlu0 %3405, %v493_v7   ;;  %v511_v49 = vld [vmem:[%s4634_s2 + $0xb0] sm:$0xff]  ;;  %v460_v50 = vld [vmem:[%s4633_s1 + $0x38] sm:$0xff]  ;;  %v461_v51 = vld [vmem:[%s4633_s1 + $0x40] sm:$0xff] }
  0x10   : > { %s3629_s29 = scalar_lea.vmem %s4632_s0, %s3393_s18  ;;  %v514_v52 = vld [vmem:[%s4634_s2 + $0xc8] sm:$0xff]  ;;  %v513_v53 = vld [vmem:[%s4634_s2 + $0xc0] sm:$0xff]  ;;  %v463_v55 = vld [vmem:[%s4633_s1 + $0x50] sm:$0xff]  ;;  %s4605_s16 = scalar_lea.vmem %s4645_s13, %s3393_s18 }
  0x11   : > { %v441_v8 = vld [vmem:[%s3629_s29] sm:$0xff]  ;;  %v442_v9 = vld [vmem:[%s3629_s29 + $0x8] sm:$0xff]  ;;  %v443_v10 = vld [vmem:[%s3629_s29 + $0x10] sm:$0xff] }
  0x12   : > { %v3177_v11 = vpack.c.bf16 %v442_v9, %v441_v8  ;;  %v444_v12 = vld [vmem:[%s3629_s29 + $0x18] sm:$0xff]  ;;  %v445_v14 = vld [vmem:[%s3629_s29 + $0x20] sm:$0xff]  ;;  %v446_v15 = vld [vmem:[%s3629_s29 + $0x28] sm:$0xff] }
  0x13   : > { %v3181_v13 = vpack.c.bf16 %v444_v12, %v443_v10  ;;  %v3185_v18 = vpack.c.bf16 %v446_v15, %v445_v14  ;;  %562 = vperm.xlu1 %3406, %v496_v16   ;;  %557 = vperm.xlu0 %3405, %v495_v17   ;;  %v447_v19 = vld [vmem:[%s3629_s29 + $0x30] sm:$0xff]  ;;  %v448_v20 = vld [vmem:[%s3629_s29 + $0x38] sm:$0xff]  ;;  %v449_v24 = vld [vmem:[%s3629_s29 + $0x40] sm:$0xff] }
  0x14   : > { %3178 = vmatprep.subr.bf16.mxu0 %v3177_v11  ;;  %v3189_v23 = vpack.c.bf16 %v448_v20, %v447_v19  ;;  %v450_v25 = vld [vmem:[%s3629_s29 + $0x48] sm:$0xff]  ;;  %v451_v29 = vld [vmem:[%s3629_s29 + $0x50] sm:$0xff]  ;;  %v452_v30 = vld [vmem:[%s3629_s29 + $0x58] sm:$0xff] }
  0x15   : > { %3180 = vmatpush3.bf16.msra.mxu0 %v3177_v11  ;;  %v3193_v28 = vpack.c.bf16 %v450_v25, %v449_v24  ;;  %v3197_v33 = vpack.c.bf16 %v452_v30, %v451_v29  ;;  %v462_v54 = vld [vmem:[%s4633_s1 + $0x48] sm:$0xff]  ;;  %v1203_v57 = vld [vmem:[%s4636_s4] sm:$0xff]  ;;  %v464_v58 = vld [vmem:[%s4633_s1 + $0x58] sm:$0xff] }
  0x16   : > { %3182 = vmatprep.subr.bf16.mxu0 %v3181_v13  ;;  %v1204_v56 = vld [vmem:[%s4636_s4 + $0x8] sm:$0xff]  ;;  %v465_v59 = vld [vmem:[%s4633_s1 + $0x60] sm:$0xff]  ;;  %v516_v60 = vld [vmem:[%s4634_s2 + $0xd8] sm:$0xff] }
  0x17   : > { %572 = vperm.xlu1 %3406, %v498_v21   ;;  %567 = vperm.xlu0 %3405, %v497_v22   ;;  %v515_v61 = vld [vmem:[%s4634_s2 + $0xd0] sm:$0xff]  ;;  %v466_v62 = vld [vmem:[%s4633_s1 + $0x68] sm:$0xff]  ;;  %v1206_v0 = vld [vmem:[%s4636_s4 + $0x18] sm:$0xff] }
  0x18   : > { %v467_v63 = vld [vmem:[%s4633_s1 + $0x70] sm:$0xff]  ;;  %v468_v2 = vld [vmem:[%s4633_s1 + $0x78] sm:$0xff]  ;;  %v469_v3 = vld [vmem:[%s4633_s1 + $0x80] sm:$0xff] }
  0x19   : > { %3184 = vmatpush3.bf16.msra.mxu0 %v3181_v13  ;;  %v1205_v1 = vld [vmem:[%s4636_s4 + $0x10] sm:$0xff]  ;;  %v518_v4 = vld [vmem:[%s4634_s2 + $0xe8] sm:$0xff]  ;;  %v517_v5 = vld [vmem:[%s4634_s2 + $0xe0] sm:$0xff] }
  0x1a   : > { %3186 = vmatprep.subr.bf16.mxu0 %v3185_v18  ;;  %v470_v6 = vld [vmem:[%s4633_s1 + $0x88] sm:$0xff]  ;;  %v471_v7 = vld [vmem:[%s4633_s1 + $0x90] sm:$0xff]  ;;  %v1207_v9 = vld [vmem:[%s4636_s4 + $0x20] sm:$0xff] }
  0x1b   : > { %582 = vperm.xlu1 %3406, %v500_v26   ;;  %577 = vperm.xlu0 %3405, %v499_v27   ;;  %v1208_v8 = vld [vmem:[%s4636_s4 + $0x28] sm:$0xff]  ;;  %v472_v10 = vld [vmem:[%s4633_s1 + $0x98] sm:$0xff]  ;;  %v473_v11 = vld [vmem:[%s4633_s1 + $0xa0] sm:$0xff] }
  0x1c   : > { %v520_v12 = vld [vmem:[%s4634_s2 + $0xf8] sm:$0xff]  ;;  %v519_v13 = vld [vmem:[%s4634_s2 + $0xf0] sm:$0xff]  ;;  %v474_v14 = vld [vmem:[%s4633_s1 + $0xa8] sm:$0xff] }
  0x1d   : > { %3188 = vmatpush3.bf16.msra.mxu0 %v3185_v18  ;;  %v475_v15 = vld [vmem:[%s4633_s1 + $0xb0] sm:$0xff]  ;;  %v1210_v16 = vld [vmem:[%s4636_s4 + $0x38] sm:$0xff]  ;;  %v477_v19 = vld [vmem:[%s4633_s1 + $0xc0] sm:$0xff] }
  0x1e   : > { %3190 = vmatprep.subr.bf16.mxu0 %v3189_v23  ;;  %v1209_v17 = vld [vmem:[%s4636_s4 + $0x30] sm:$0xff]  ;;  %v476_v18 = vld [vmem:[%s4633_s1 + $0xb8] sm:$0xff]  ;;  %v522_v20 = vld [vmem:[%s4634_s2 + $0x108] sm:$0xff] }
  0x1f   : > { %592 = vperm.xlu1 %3406, %v502_v31   ;;  %587 = vperm.xlu0 %3405, %v501_v32   ;;  %v521_v21 = vld [vmem:[%s4634_s2 + $0x100] sm:$0xff]  ;;  %v478_v22 = vld [vmem:[%s4633_s1 + $0xc8] sm:$0xff]  ;;  %v480_v26 = vld [vmem:[%s4633_s1 + $0xd8] sm:$0xff] }
  0x20   : > { %v1212_v24 = vld [vmem:[%s4636_s4 + $0x48] sm:$0xff]  ;;  %v1211_v25 = vld [vmem:[%s4636_s4 + $0x40] sm:$0xff]  ;;  %v523_v29 = vld [vmem:[%s4634_s2 + $0x110] sm:$0xff] }
  0x21   : > { %3192 = vmatpush3.bf16.msra.mxu0 %v3189_v23  ;;  %v479_v23 = vld [vmem:[%s4633_s1 + $0xd0] sm:$0xff]  ;;  %v481_v27 = vld [vmem:[%s4633_s1 + $0xe0] sm:$0xff]  ;;  %v482_v30 = vld [vmem:[%s4633_s1 + $0xe8] sm:$0xff] }
  0x22   : > { %3194 = vmatprep.subr.bf16.mxu0 %v3193_v28  ;;  %v483_v31 = vld [vmem:[%s4633_s1 + $0xf0] sm:$0xff]  ;;  %v1214_v32 = vld [vmem:[%s4636_s4 + $0x58] sm:$0xff] }
  0x23   : > { %602 = vperm.xlu1 %3406, %v504_v34   ;;  %597 = vperm.xlu0 %3405, %v503_v35   ;;  %v484_v34 = vld [vmem:[%s4633_s1 + $0xf8] sm:$0xff]  ;;  %v485_v35 = vld [vmem:[%s4633_s1 + $0x100] sm:$0xff] }
  0x25   : > { %3196 = vmatpush3.bf16.msra.mxu0 %v3193_v28  ;;  %v524_v28 = vld [vmem:[%s4634_s2 + $0x118] sm:$0xff] }
  0x26   : > { %3198 = vmatprep.subr.bf16.mxu0 %v3197_v33 }
  0x27   : > { %612 = vperm.xlu1 %3406, %v506_v36   ;;  %607 = vperm.xlu0 %3405, %v505_v37   ;;  %v1478_v36 = vld [vmem:[%s4638_s6 + $0x8] sm:$0xff]  ;;  %v1477_v37 = vld [vmem:[%s4638_s6] sm:$0xff] }
  0x29   : > { %3200 = vmatpush3.bf16.msra.mxu0 %v3197_v33  ;;  %v1213_v33 = vld [vmem:[%s4636_s4 + $0x50] sm:$0xff] }
  0x2b   : > { %622 = vperm.xlu1 %3406, %v508_v40   ;;  %617 = vperm.xlu0 %3405, %v507_v41   ;;  %v1480_v40 = vld [vmem:[%s4638_s6 + $0x18] sm:$0xff]  ;;  %v1479_v41 = vld [vmem:[%s4638_s6 + $0x10] sm:$0xff] }
  0x2c   : > { %2958 = vmatmul.mubr.msk.f32.vlgmr.msra.gmra.mrb[0].mxu0 %vm705_vm0, %v454_v38  ;;  %v486_v38 = vld [vmem:[%s4633_s1 + $0x108] sm:$0xff] }
  0x2d   : > { %2960 = vmatprep.mubr.msk.f32.mxu0 %vm705_vm0, %v455_v39  ;;  %v487_v39 = vld [vmem:[%s4633_s1 + $0x110] sm:$0xff] }
  0x2f   : > { %632 = vperm.xlu1 %3406, %v510_v44   ;;  %627 = vperm.xlu0 %3405, %v509_v45   ;;  %v1481_v44 = vld [vmem:[%s4638_s6 + $0x20] sm:$0xff]  ;;  %v1484_v45 = vld [vmem:[%s4638_s6 + $0x38] sm:$0xff] }
  0x30   : > { %2961 = vmatmul.mubr.msk.f32.gmra.mrb[2].mxu0 %vm705_vm0, %v456_v42  ;;  %v488_v42 = vld [vmem:[%s4633_s1 + $0x118] sm:$0xff] }
  0x31   : > { %2963 = vmatprep.mubr.msk.f32.mxu0 %vm705_vm0, %v457_v43  ;;  %v1482_v43 = vld [vmem:[%s4638_s6 + $0x28] sm:$0xff] }
  0x33   : > { %642 = vperm.xlu1 %3406, %v512_v48   ;;  %637 = vperm.xlu0 %3405, %v511_v49   ;;  %v1485_v48 = vld [vmem:[%s4638_s6 + $0x40] sm:$0xff]  ;;  %v1488_v49 = vld [vmem:[%s4638_s6 + $0x58] sm:$0xff] }
  0x34   : > { %2964 = vmatmul.mubr.msk.f32.gmra.mrb[4].mxu0 %vm705_vm0, %v458_v46  ;;  %v1483_v46 = vld [vmem:[%s4638_s6 + $0x30] sm:$0xff] }
  0x35   : > { %2966 = vmatprep.mubr.msk.f32.mxu0 %vm705_vm0, %v459_v47  ;;  %v1486_v47 = vld [vmem:[%s4638_s6 + $0x48] sm:$0xff] }
  0x37   : > { %652 = vperm.xlu1 %3406, %v514_v52   ;;  %647 = vperm.xlu0 %3405, %v513_v53   ;;  %v1489_v52 = vld [vmem:[%s4638_s6 + $0x60] sm:$0xff]  ;;  %v1492_v53 = vld [vmem:[%s4638_s6 + $0x78] sm:$0xff] }
  0x38   : > { %2967 = vmatmul.mubr.msk.f32.gmra.mrb[6].mxu0 %vm705_vm0, %v460_v50  ;;  %v1487_v50 = vld [vmem:[%s4638_s6 + $0x50] sm:$0xff] }
  0x39   : > { %2969 = vmatprep.mubr.msk.f32.mxu0 %vm705_vm0, %v461_v51  ;;  %v1490_v51 = vld [vmem:[%s4638_s6 + $0x68] sm:$0xff] }
  0x3b   : > { %1222 = vperm.xlu1 %3406, %v1204_v56   ;;  %1217 = vperm.xlu0 %3405, %v1203_v57   ;;  %v1493_v56 = vld [vmem:[%s4638_s6 + $0x80] sm:$0xff]  ;;  %v2027_v57 = vld [vmem:[%s4640_s8 + $0x8] sm:$0xff] }
  0x3c   : > { %2970 = vmatmul.mubr.msk.f32.gmra.mrb[8].mxu0 %vm705_vm0, %v462_v54  ;;  %v1491_v54 = vld [vmem:[%s4638_s6 + $0x70] sm:$0xff] }
  0x3d   : > { %2972 = vmatprep.mubr.msk.f32.mxu0 %vm705_vm0, %v463_v55  ;;  %v2026_v55 = vld [vmem:[%s4640_s8] sm:$0xff] }
  0x3f   : > { %662 = vperm.xlu1 %3406, %v516_v60   ;;  %657 = vperm.xlu0 %3405, %v515_v61   ;;  %v1495_v60 = vld [vmem:[%s4638_s6 + $0x90] sm:$0xff]  ;;  %v2029_v61 = vld [vmem:[%s4640_s8 + $0x18] sm:$0xff] }
  0x40   : > { %2973 = vmatmul.mubr.msk.f32.gmra.mrb[10].mxu0 %vm705_vm0, %v464_v58  ;;  %v1494_v58 = vld [vmem:[%s4638_s6 + $0x88] sm:$0xff] }
  0x41   : > { %2975 = vmatprep.mubr.msk.f32.mxu0 %vm705_vm0, %v465_v59  ;;  %v2028_v59 = vld [vmem:[%s4640_s8 + $0x10] sm:$0xff] }
  0x43   : > { %1232 = vperm.xlu1 %3406, %v1206_v0   ;;  %1227 = vperm.xlu0 %3405, %v1205_v1   ;;  %v2030_v0 = vld [vmem:[%s4640_s8 + $0x20] sm:$0xff] }
  0x44   : > { %2976 = vmatmul.mubr.msk.f32.gmra.mrb[12].mxu0 %vm705_vm0, %v466_v62  ;;  %v1496_v62 = vld [vmem:[%s4638_s6 + $0x98] sm:$0xff]  ;;  %v1497_v1 = vld [vmem:[%s4638_s6 + $0xa0] sm:$0xff] }
  0x45   : > { %2978 = vmatprep.mubr.msk.f32.mxu0 %vm705_vm0, %v467_v63  ;;  %v3520_v63 = vmov 0.0|0.0  }
  0x46   : > { %3201 = vmatprep.subr.bf16.mxu1 %v3520_v63 }
  0x47   : > { %672 = vperm.xlu1 %3406, %v518_v4   ;;  %667 = vperm.xlu0 %3405, %v517_v5   ;;  %v2032_v4 = vld [vmem:[%s4640_s8 + $0x30] sm:$0xff] }
  0x48   : > { %2979 = vmatmul.mubr.msk.f32.gmra.mrb[14].mxu0 %vm705_vm0, %v468_v2  ;;  %v2031_v2 = vld [vmem:[%s4640_s8 + $0x28] sm:$0xff]  ;;  %v1499_v5 = vld [vmem:[%s4638_s6 + $0xb0] sm:$0xff] }
  0x49   : > { %2981 = vmatprep.mubr.msk.f32.mxu0 %vm705_vm0, %v469_v3  ;;  %v1498_v3 = vld [vmem:[%s4638_s6 + $0xa8] sm:$0xff] }
  0x4b   : > { %1242 = vperm.xlu1 %3406, %v1208_v8   ;;  %1237 = vperm.xlu0 %3405, %v1207_v9   ;;  %v2034_v8 = vld [vmem:[%s4640_s8 + $0x40] sm:$0xff] }
  0x4c   : > { %2982 = vmatmul.mubr.msk.f32.gmra.mrb[16].mxu0 %vm705_vm0, %v470_v6  ;;  %v2033_v6 = vld [vmem:[%s4640_s8 + $0x38] sm:$0xff]  ;;  %v1501_v9 = vld [vmem:[%s4638_s6 + $0xc0] sm:$0xff] }
  0x4d   : > { %2984 = vmatprep.mubr.msk.f32.mxu0 %vm705_vm0, %v471_v7  ;;  %v1500_v7 = vld [vmem:[%s4638_s6 + $0xb8] sm:$0xff] }
  0x4f   : > { %682 = vperm.xlu1 %3406, %v520_v12   ;;  %677 = vperm.xlu0 %3405, %v519_v13   ;;  %v2036_v12 = vld [vmem:[%s4640_s8 + $0x50] sm:$0xff] }
  0x50   : > { %2985 = vmatmul.mubr.msk.f32.gmra.mrb[18].mxu0 %vm705_vm0, %v472_v10  ;;  %v2035_v10 = vld [vmem:[%s4640_s8 + $0x48] sm:$0xff]  ;;  %v1503_v13 = vld [vmem:[%s4638_s6 + $0xd0] sm:$0xff] }
  0x51   : > { %2987 = vmatprep.mubr.msk.f32.mxu0 %vm705_vm0, %v473_v11  ;;  %v1502_v11 = vld [vmem:[%s4638_s6 + $0xc8] sm:$0xff] }
  0x53   : > { %1252 = vperm.xlu1 %3406, %v1210_v16   ;;  %1247 = vperm.xlu0 %3405, %v1209_v17   ;;  %v1180_v16 = vld [vmem:[%s4635_s3 + $0x8] sm:$0xff] }
  0x54   : > { %2988 = vmatmul.mubr.msk.f32.gmra.mrb[20].mxu0 %vm705_vm0, %v474_v14  ;;  %v2037_v14 = vld [vmem:[%s4640_s8 + $0x58] sm:$0xff]  ;;  %2746 = vmatprep.mubr.msk.f32.mxu1 %vm1275_vm1, %v1180_v16 }
  0x55   : > { %2990 = vmatprep.mubr.msk.f32.mxu0 %vm705_vm0, %v475_v15  ;;  %v1504_v15 = vld [vmem:[%s4638_s6 + $0xd8] sm:$0xff] }
  0x57   : > { %692 = vperm.xlu1 %3406, %v522_v20   ;;  %687 = vperm.xlu0 %3405, %v521_v21  }
  0x58   : > { %2991 = vmatmul.mubr.msk.f32.gmra.mrb[22].mxu0 %vm705_vm0, %v476_v18 }
  0x59   : > { %2993 = vmatprep.mubr.msk.f32.mxu0 %vm705_vm0, %v477_v19 }
  0x5b   : > { %1262 = vperm.xlu1 %3406, %v1212_v24   ;;  %1257 = vperm.xlu0 %3405, %v1211_v25  }
  0x5c   : > { %2994 = vmatmul.mubr.msk.f32.gmra.mrb[24].mxu0 %vm705_vm0, %v478_v22 }
  0x5d   : > { %2996 = vmatprep.mubr.msk.f32.mxu0 %vm705_vm0, %v479_v23 }
  0x5f   : > { %702 = vperm.xlu1 %3406, %v524_v28   ;;  %697 = vperm.xlu0 %3405, %v523_v29  }
  0x60   : > { %2997 = vmatmul.mubr.msk.f32.gmra.mrb[26].mxu0 %vm705_vm0, %v480_v26 }
  0x61   : > { %2999 = vmatprep.mubr.msk.f32.mxu0 %vm705_vm0, %v481_v27 }
  0x63   : > { %1272 = vperm.xlu1 %3406, %v1214_v32   ;;  %1267 = vperm.xlu0 %3405, %v1213_v33  }
  0x64   : > { %3000 = vmatmul.mubr.msk.f32.gmra.mrb[28].mxu0 %vm705_vm0, %v482_v30 }
  0x65   : > { %3002 = vmatprep.mubr.msk.f32.mxu0 %vm705_vm0, %v483_v31 }
  0x67   : > { %1512 = vperm.xlu1 %3406, %v1478_v36   ;;  %1507 = vperm.xlu0 %3405, %v1477_v37  }
  0x68   : > { %3003 = vmatmul.mubr.msk.f32.gmra.mrb[30].mxu0 %vm705_vm0, %v484_v34 }
  0x69   : > { %3005 = vmatprep.mubr.msk.f32.mxu0 %vm705_vm0, %v485_v35 }
  0x6b   : > { %1522 = vperm.xlu1 %3406, %v1480_v40   ;;  %1517 = vperm.xlu0 %3405, %v1479_v41  }
  0x6c   : > { %3006 = vmatmul.mubr.msk.f32.gmra.mrb[32].mxu0 %vm705_vm0, %v486_v38 }
  0x6d   : > { %3008 = vmatprep.mubr.msk.f32.mxu0 %vm705_vm0, %v487_v39 }
  0x6f   : > { %1532 = vperm.xlu1 %3406, %v1482_v43   ;;  %1527 = vperm.xlu0 %3405, %v1481_v44  }
  0x70   : > { %3009 = vmatmul.mubr.msk.f32.gmra.mrb[34].mxu0 %vm705_vm0, %v488_v42 }
  0x73   : > { %1542 = vperm.xlu1 %3406, %v1484_v45   ;;  %1537 = vperm.xlu0 %3405, %v1483_v46  }
  0x77   : > { %1552 = vperm.xlu1 %3406, %v1486_v47   ;;  %1547 = vperm.xlu0 %3405, %v1485_v48  }
  0x7b   : > { %1562 = vperm.xlu1 %3406, %v1488_v49   ;;  %1557 = vperm.xlu0 %3405, %v1487_v50  }
  0x7f   : > { %1572 = vperm.xlu1 %3406, %v1490_v51   ;;  %1567 = vperm.xlu0 %3405, %v1489_v52  }
  0x83   : > { %1582 = vperm.xlu1 %3406, %v1492_v53   ;;  %1577 = vperm.xlu0 %3405, %v1491_v54  }
  0x86   : > { %v538_v17 = vpop.permute.xlu1 %537  ;;  %v528_v18 = vpop.permute.xlu0 %527 }
  0x87   : > { %2040 = vperm.xlu1 %3406, %v2026_v55   ;;  %1587 = vperm.xlu0 %3405, %v1493_v56  }
  0x8a   : > { %v543_v19 = vpop.permute.xlu1 %542  ;;  %v533_v20 = vpop.permute.xlu0 %532 }
  0x8b   : > { %2045 = vperm.xlu1 %3406, %v2027_v57   ;;  %1592 = vperm.xlu0 %3405, %v1494_v58  }
  0x8e   : > { %v553_v21 = vpop.permute.xlu1 %552  ;;  %v548_v22 = vpop.permute.xlu0 %547 }
  0x8f   : > { %2050 = vperm.xlu1 %3406, %v2028_v59   ;;  %1597 = vperm.xlu0 %3405, %v1495_v60  }
  0x92   : > { %v563_v23 = vpop.permute.xlu1 %562  ;;  %v558_v24 = vpop.permute.xlu0 %557 }
  0x93   : > { %2055 = vperm.xlu1 %3406, %v2029_v61   ;;  %1602 = vperm.xlu0 %3405, %v1496_v62  }
  0x96   : > { %v573_v28 = vpop.permute.xlu1 %572  ;;  %v568_v30 = vpop.permute.xlu0 %567 }
  0x97   : > { %2060 = vperm.xlu1 %3406, %v2030_v0   ;;  %1607 = vperm.xlu0 %3405, %v1497_v1  }
  0x9a   : > { %v583_v38 = vpop.permute.xlu1 %582  ;;  %v578_v41 = vpop.permute.xlu0 %577 }
  0x9b   : > { %2065 = vperm.xlu1 %3406, %v2031_v2   ;;  %1612 = vperm.xlu0 %3405, %v1498_v3  }
  0x9e   : > { %v593_v50 = vpop.permute.xlu1 %592  ;;  %v588_v53 = vpop.permute.xlu0 %587 }
  0x9f   : > { %2070 = vperm.xlu1 %3406, %v2032_v4   ;;  %1617 = vperm.xlu0 %3405, %v1499_v5  }
  0xa3   : > { %2075 = vperm.xlu1 %3406, %v2033_v6   ;;  %1622 = vperm.xlu0 %3405, %v1500_v7   ;;  %v603_v7 = vpop.permute.xlu1 %602 }
  0xa7   : > { %2080 = vperm.xlu1 %3406, %v2034_v8   ;;  %1627 = vperm.xlu0 %3405, %v1501_v9  }
  0xab   : > { %2085 = vperm.xlu1 %3406, %v2035_v10   ;;  %1632 = vperm.xlu0 %3405, %v1502_v11  }
  0xaf   : > { %2090 = vperm.xlu1 %3406, %v2036_v12   ;;  %1637 = vperm.xlu0 %3405, %v1503_v13   ;;  %v598_v13 = vpop.permute.xlu0 %597 }
  0xb3   : > { %2095 = vperm.xlu1 %3406, %v2037_v14   ;;  %1642 = vperm.xlu0 %3405, %v1504_v15  }
  0xff   : > { %v2959_v25 = vpop.f32.mrb[0].mxu0 }
 0x100   : > { %v886_v26 = vadd.f32 %v2959_v25, %v533_v20  ;;  %v880_v27 = vpop.f32.mrb[1].mxu0 }
 0x101   : > { %v881_v29 = vadd.f32 %v880_v27, %v528_v18 }
 0x102   : > { %v1084_v31 = vmul.f32 0.70710677, %v886_v26  ;;  %v1060_v56 = vmul.f32 0.5, %v886_v26 }
 0x103   : > { %v1083_v32 = vmul.f32 0.70710677, %v881_v29  ;;  %v2962_v33 = vpop.f32.mrb[2].mxu0  ;;  %v1059_v60 = vmul.f32 0.5, %v881_v29 }
 0x104   : > { %3407 = verf.f32 %v1084_v31  ;;  %v896_v34 = vadd.f32 %v2962_v33, %v543_v19  ;;  %v890_v35 = vpop.f32.mrb[3].mxu0  ;;  %v613_v33 = vpop.permute.xlu1 %612 }
 0x105   : > { %3409 = verf.f32 %v1083_v32  ;;  %v891_v36 = vadd.f32 %v890_v35, %v538_v17 }
 0x106   : > { %v1086_v37 = vmul.f32 0.70710677, %v896_v34  ;;  %v1062_v8 = vmul.f32 0.5, %v896_v34 }
 0x107   : > { %v1085_v39 = vmul.f32 0.70710677, %v891_v36  ;;  %v2965_v40 = vpop.f32.mrb[4].mxu0  ;;  %v1061_v10 = vmul.f32 0.5, %v891_v36 }
 0x108   : > { %3411 = verf.f32 %v1086_v37  ;;  %v906_v42 = vadd.f32 %v2965_v40, %v553_v21  ;;  %v900_v43 = vpop.f32.mrb[5].mxu0  ;;  %v608_v37 = vpop.permute.xlu0 %607 }
 0x109   : > { %3413 = verf.f32 %v1085_v39  ;;  %v901_v44 = vadd.f32 %v900_v43, %v548_v22 }
 0x10a   : > { %v1088_v45 = vmul.f32 0.70710677, %v906_v42 }
 0x10b   : > { %v1087_v46 = vmul.f32 0.70710677, %v901_v44  ;;  %v2968_v47 = vpop.f32.mrb[6].mxu0  ;;  %v1063_v26 = vmul.f32 0.5, %v901_v44 }
 0x10c   : > { %3415 = verf.f32 %v1088_v45  ;;  %v4035_v48 = vadd.f32 %v2968_v47, %v563_v23  ;;  %v910_v49 = vpop.f32.mrb[7].mxu0 }
 0x10d   : > { %3417 = verf.f32 %v1087_v46  ;;  %v4037_v51 = vadd.f32 %v910_v49, %v558_v24  ;;  %v1064_v24 = vmul.f32 0.5, %v906_v42 }
 0x10e   : > { %v3408_v52 = vpop.eup %3407  ;;  %v1090_v54 = vmul.f32 0.70710677, %v4035_v48 }
 0x10f   : > { %v3410_v55 = vpop.eup %3409  ;;  %v1089_v57 = vmul.f32 0.70710677, %v4037_v51  ;;  %v2971_v58 = vpop.f32.mrb[8].mxu0  ;;  %v1132_v59 = vadd.f32 1.0, %v3408_v52  ;;  %v1065_v43 = vmul.f32 0.5, %v4037_v51 }
 0x110   : > { %3419 = verf.f32 %v1090_v54  ;;  %v4041_v61 = vadd.f32 %v2971_v58, %v573_v28  ;;  %v920_v62 = vpop.f32.mrb[9].mxu0  ;;  %v1131_v0 = vadd.f32 1.0, %v3410_v55 }
 0x111   : > { %3421 = verf.f32 %v1089_v57  ;;  %v4043_v1 = vadd.f32 %v920_v62, %v568_v30  ;;  %v1156_v2 = vmul.f32 %v1132_v59, %v1060_v56  ;;  %v623_v56 = vpop.permute.xlu1 %622 }
 0x112   : > { %v3412_v3 = vpop.eup %3411  ;;  %v1092_v4 = vmul.f32 0.70710677, %v4041_v61  ;;  %v1155_v5 = vmul.f32 %v1131_v0, %v1059_v60  ;;  %v1068_v57 = vmul.f32 0.5, %v4041_v61  ;;  %v618_v0 = vpop.permute.xlu0 %617 }
 0x113   : > { %v3414_v6 = vpop.eup %3413  ;;  %v1134_v9 = vadd.f32 1.0, %v3412_v3  ;;  %v1091_v11 = vmul.f32 0.70710677, %v4043_v1  ;;  %v2974_v12 = vpop.f32.mrb[10].mxu0  ;;  %v1067_v59 = vmul.f32 0.5, %v4043_v1 }
 0x114   : > { %v1133_v14 = vadd.f32 1.0, %v3414_v6  ;;  %3423 = verf.f32 %v1092_v4  ;;  %v4047_v15 = vadd.f32 %v2974_v12, %v583_v38  ;;  %v930_v16 = vpop.f32.mrb[11].mxu0  ;;  %v3202_v17 = vpack.c.bf16 %v1156_v2, %v1155_v5 }
 0x115   : > { %v1158_v18 = vmul.f32 %v1134_v9, %v1062_v8  ;;  %3425 = verf.f32 %v1091_v11  ;;  %v4049_v19 = vadd.f32 %v930_v16, %v578_v41  ;;  %v1066_v41 = vmul.f32 0.5, %v4035_v48 }
 0x116   : > { %v3416_v20 = vpop.eup %3415  ;;  %v1157_v21 = vmul.f32 %v1133_v14, %v1061_v10  ;;  %v1094_v22 = vmul.f32 0.70710677, %v4047_v15  ;;  %3203 = vmatpush1.bf16.msra.mxu1 %v3202_v17  ;;  %v1070_v10 = vmul.f32 0.5, %v4047_v15 }
 0x117   : > { %v3418_v23 = vpop.eup %3417  ;;  %v1136_v25 = vadd.f32 1.0, %v3416_v20  ;;  %v1093_v27 = vmul.f32 0.70710677, %v4049_v19  ;;  %v2977_v28 = vpop.f32.mrb[12].mxu0  ;;  %3204 = vmatprep.subr.bf16.mxu1 %v3520_v63  ;;  %v1069_v12 = vmul.f32 0.5, %v4049_v19 }
 0x118   : > { %v1135_v29 = vadd.f32 1.0, %v3418_v23  ;;  %3427 = verf.f32 %v1094_v22  ;;  %v4054_v30 = vadd.f32 %v2977_v28, %v593_v50  ;;  %v940_v31 = vpop.f32.mrb[13].mxu0  ;;  %v3205_v32 = vpack.c.bf16 %v1158_v18, %v1157_v21  ;;  %v633_v21 = vpop.permute.xlu1 %632 }
 0x119   : > { %v1160_v34 = vmul.f32 %v1136_v25, %v1064_v24  ;;  %3429 = verf.f32 %v1093_v27  ;;  %v4056_v35 = vadd.f32 %v940_v31, %v588_v53  ;;  %v628_v24 = vpop.permute.xlu0 %627 }
 0x11a   : > { %v3420_v36 = vpop.eup %3419  ;;  %v1159_v38 = vmul.f32 %v1135_v29, %v1063_v26  ;;  %v1096_v39 = vmul.f32 0.70710677, %v4054_v30  ;;  %3206 = vmatpush1.bf16.msra.mxu1 %v3205_v32  ;;  %v1072_v27 = vmul.f32 0.5, %v4054_v30 }
 0x11b   : > { %v3422_v40 = vpop.eup %3421  ;;  %v1138_v42 = vadd.f32 1.0, %v3420_v36  ;;  %v1095_v44 = vmul.f32 0.70710677, %v4056_v35  ;;  %v2980_v45 = vpop.f32.mrb[14].mxu0  ;;  %3207 = vmatprep.subr.bf16.mxu1 %v3520_v63  ;;  %v1071_v29 = vmul.f32 0.5, %v4056_v35 }
 0x11c   : > { %v1137_v46 = vadd.f32 1.0, %v3422_v40  ;;  %3431 = verf.f32 %v1096_v39  ;;  %v4063_v47 = vadd.f32 %v2980_v45, %v603_v7  ;;  %v950_v49 = vpop.f32.mrb[15].mxu0  ;;  %v3208_v50 = vpack.c.bf16 %v1160_v34, %v1159_v38 }
 0x11d   : > { %v1162_v52 = vmul.f32 %v1138_v42, %v1066_v41  ;;  %3433 = verf.f32 %v1095_v44  ;;  %v4065_v53 = vadd.f32 %v950_v49, %v598_v13 }
 0x11e   : > { %v3424_v54 = vpop.eup %3423  ;;  %v1161_v48 = vmul.f32 %v1137_v46, %v1065_v43  ;;  %v1098_v55 = vmul.f32 0.70710677, %v4063_v47  ;;  %3209 = vmatpush1.bf16.msra.mxu1 %v3208_v50  ;;  %v643_v43 = vpop.permute.xlu1 %642  ;;  %v1074_v35 = vmul.f32 0.5, %v4063_v47 }
 0x11f   : > { %v3426_v51 = vpop.eup %3425  ;;  %v1140_v58 = vadd.f32 1.0, %v3424_v54  ;;  %v1097_v60 = vmul.f32 0.70710677, %v4065_v53  ;;  %v2983_v62 = vpop.f32.mrb[16].mxu0  ;;  %3210 = vmatprep.subr.bf16.mxu1 %v3520_v63  ;;  %v1073_v45 = vmul.f32 0.5, %v4065_v53 }
 0x120   : > { %v1139_v2 = vadd.f32 1.0, %v3426_v51  ;;  %3435 = verf.f32 %v1098_v55  ;;  %v4072_v3 = vadd.f32 %v2983_v62, %v613_v33  ;;  %v960_v4 = vpop.f32.mrb[17].mxu0  ;;  %v3211_v5 = vpack.c.bf16 %v1162_v52, %v1161_v48  ;;  %v638_v50 = vpop.permute.xlu0 %637 }
 0x121   : > { %v1164_v6 = vmul.f32 %v1140_v58, %v1068_v57  ;;  %3437 = verf.f32 %v1097_v60  ;;  %v4074_v7 = vadd.f32 %v960_v4, %v608_v37 }
 0x122   : > { %v3428_v61 = vpop.eup %3427  ;;  %v1163_v8 = vmul.f32 %v1139_v2, %v1067_v59  ;;  %v1100_v1 = vmul.f32 0.70710677, %v4072_v3  ;;  %3212 = vmatpush1.bf16.msra.mxu1 %v3211_v5  ;;  %v1076_v53 = vmul.f32 0.5, %v4072_v3 }
 0x123   : > { %v3430_v9 = vpop.eup %3429  ;;  %v1142_v11 = vadd.f32 1.0, %v3428_v61  ;;  %v1099_v13 = vmul.f32 0.70710677, %v4074_v7  ;;  %v2986_v14 = vpop.f32.mrb[18].mxu0  ;;  %3213 = vmatprep.subr.bf16.mxu1 %v3520_v63  ;;  %v1075_v2 = vmul.f32 0.5, %v4074_v7 }
 0x124   : > { %v1141_v16 = vadd.f32 1.0, %v3430_v9  ;;  %3439 = verf.f32 %v1100_v1  ;;  %v4081_v17 = vadd.f32 %v2986_v14, %v623_v56  ;;  %v970_v18 = vpop.f32.mrb[19].mxu0  ;;  %v3214_v20 = vpack.c.bf16 %v1164_v6, %v1163_v8 }
 0x125   : > { %v1166_v22 = vmul.f32 %v1142_v11, %v1070_v10  ;;  %3441 = verf.f32 %v1099_v13  ;;  %v4083_v23 = vadd.f32 %v970_v18, %v618_v0 }
 0x126   : > { %v3432_v15 = vpop.eup %3431  ;;  %v1165_v25 = vmul.f32 %v1141_v16, %v1069_v12  ;;  %v1102_v19 = vmul.f32 0.70710677, %v4081_v17  ;;  %3215 = vmatpush1.bf16.msra.mxu1 %v3214_v20  ;;  %v1078_v3 = vmul.f32 0.5, %v4081_v17 }
 0x127   : > { %v3434_v26 = vpop.eup %3433  ;;  %v1144_v28 = vadd.f32 1.0, %v3432_v15  ;;  %v1101_v31 = vmul.f32 0.70710677, %v4083_v23  ;;  %v2989_v32 = vpop.f32.mrb[20].mxu0  ;;  %3216 = vmatprep.subr.bf16.mxu1 %v3520_v63  ;;  %v1077_v7 = vmul.f32 0.5, %v4083_v23 }
 0x128   : > { %v1143_v33 = vadd.f32 1.0, %v3434_v26  ;;  %3443 = verf.f32 %v1102_v19  ;;  %v986_v34 = vadd.f32 %v2989_v32, %v633_v21  ;;  %v980_v36 = vpop.f32.mrb[21].mxu0  ;;  %v3217_v37 = vpack.c.bf16 %v1166_v22, %v1165_v25 }
 0x129   : > { %v1168_v38 = vmul.f32 %v1144_v28, %v1072_v27  ;;  %3445 = verf.f32 %v1101_v31  ;;  %v981_v39 = vadd.f32 %v980_v36, %v628_v24 }
 0x12a   : > { %v3436_v40 = vpop.eup %3435  ;;  %v1167_v41 = vmul.f32 %v1143_v33, %v1071_v29  ;;  %v1104_v42 = vmul.f32 0.70710677, %v986_v34  ;;  %3218 = vmatpush1.bf16.msra.mxu1 %v3217_v37  ;;  %v1080_v22 = vmul.f32 0.5, %v986_v34 }
 0x12b   : > { %v3438_v30 = vpop.eup %3437  ;;  %v1146_v44 = vadd.f32 1.0, %v3436_v40  ;;  %v1103_v46 = vmul.f32 0.70710677, %v981_v39  ;;  %v2992_v49 = vpop.f32.mrb[22].mxu0  ;;  %3219 = vmatprep.subr.bf16.mxu1 %v3520_v63  ;;  %v1079_v17 = vmul.f32 0.5, %v981_v39 }
 0x12c   : > { %v1145_v52 = vadd.f32 1.0, %v3438_v30  ;;  %3447 = verf.f32 %v1104_v42  ;;  %v996_v54 = vadd.f32 %v2992_v49, %v643_v43  ;;  %v990_v48 = vpop.f32.mrb[23].mxu0  ;;  %v3220_v55 = vpack.c.bf16 %v1168_v38, %v1167_v41  ;;  %v1179_v43 = vld [vmem:[%s4635_s3] sm:$0xff] }
 0x12d   : > { %v1170_v51 = vmul.f32 %v1146_v44, %v1074_v35  ;;  %3449 = verf.f32 %v1103_v46  ;;  %v991_v56 = vadd.f32 %v990_v48, %v638_v50  ;;  %v1182_v44 = vld [vmem:[%s4635_s3 + $0x18] sm:$0xff]  ;;  %v1184_v46 = vld [vmem:[%s4635_s3 + $0x28] sm:$0xff]  ;;  %v1183_v49 = vld [vmem:[%s4635_s3 + $0x20] sm:$0xff] }
 0x12e   : > { %v3440_v57 = vpop.eup %3439  ;;  %v1169_v58 = vmul.f32 %v1145_v52, %v1073_v45  ;;  %v1106_v59 = vmul.f32 0.70710677, %v996_v54  ;;  %3221 = vmatpush1.bf16.msra.mxu1 %v3220_v55  ;;  %v1082_v31 = vmul.f32 0.5, %v996_v54  ;;  %v1186_v50 = vld [vmem:[%s4635_s3 + $0x38] sm:$0xff]  ;;  %v1185_v52 = vld [vmem:[%s4635_s3 + $0x30] sm:$0xff]  ;;  %v1188_v54 = vld [vmem:[%s4635_s3 + $0x48] sm:$0xff] }
 0x12f   : > { %v3442_v47 = vpop.eup %3441  ;;  %v1148_v60 = vadd.f32 1.0, %v3440_v57  ;;  %v1105_v62 = vmul.f32 0.70710677, %v991_v56  ;;  %v4094_v0 = vpop.f32.mrb[24].mxu0  ;;  %3222 = vmatprep.subr.bf16.mxu1 %v3520_v63  ;;  %v1081_v34 = vmul.f32 0.5, %v991_v56  ;;  %v1187_v48 = vld [vmem:[%s4635_s3 + $0x40] sm:$0xff] }
 0x130   : > { %v1147_v4 = vadd.f32 1.0, %v3442_v47  ;;  %3451 = verf.f32 %v1106_v59  ;;  %v4098_v5 = vpop.f32.mrb[25].mxu0  ;;  %v3223_v6 = vpack.c.bf16 %v1170_v51, %v1169_v58  ;;  %v1190_v55 = vld [vmem:[%s4635_s3 + $0x58] sm:$0xff]  ;;  %v1189_v51 = vld [vmem:[%s4635_s3 + $0x50] sm:$0xff]  ;;  %v1192_v56 = vld [vmem:[%s4635_s3 + $0x68] sm:$0xff] }
 0x131   : > { %v1172_v61 = vmul.f32 %v1148_v60, %v1076_v53  ;;  %3453 = verf.f32 %v1105_v62  ;;  %v1191_v57 = vld [vmem:[%s4635_s3 + $0x60] sm:$0xff]  ;;  %v1194_v58 = vld [vmem:[%s4635_s3 + $0x78] sm:$0xff]  ;;  %v1193_v59 = vld [vmem:[%s4635_s3 + $0x70] sm:$0xff] }
 0x132   : > { %v3444_v8 = vpop.eup %3443  ;;  %v1171_v1 = vmul.f32 %v1147_v4, %v1075_v2  ;;  %3224 = vmatpush1.bf16.msra.mxu1 %v3223_v6  ;;  %v1196_v47 = vld [vmem:[%s4635_s3 + $0x88] sm:$0xff]  ;;  %v1195_v53 = vld [vmem:[%s4635_s3 + $0x80] sm:$0xff]  ;;  %v1198_v60 = vld [vmem:[%s4635_s3 + $0x98] sm:$0xff] }
 0x133   : > { %v3446_v9 = vpop.eup %3445  ;;  %v1150_v10 = vadd.f32 1.0, %v3444_v8  ;;  %v4101_v11 = vpop.f32.mrb[26].mxu0  ;;  %3225 = vmatprep.subr.bf16.mxu1 %v3520_v63  ;;  %v1197_v62 = vld [vmem:[%s4635_s3 + $0x90] sm:$0xff]  ;;  %v1200_v2 = vld [vmem:[%s4635_s3 + $0xa8] sm:$0xff]  ;;  %v1199_v4 = vld [vmem:[%s4635_s3 + $0xa0] sm:$0xff] }
 0x134   : > { %v1149_v12 = vadd.f32 1.0, %v3446_v9  ;;  %v4105_v13 = vpop.f32.mrb[27].mxu0  ;;  %v3226_v14 = vpack.c.bf16 %v1172_v61, %v1171_v1  ;;  %v1202_v6 = vld [vmem:[%s4635_s3 + $0xb8] sm:$0xff]  ;;  %v1201_v61 = vld [vmem:[%s4635_s3 + $0xb0] sm:$0xff]  ;;  %v1449_v8 = vld [vmem:[%s4637_s5] sm:$0xff]  ;;  %v648_v1 = vpop.permute.xlu0 %647 }
 0x135   : > { %v1174_v16 = vmul.f32 %v1150_v10, %v1078_v3  ;;  %3035 = vmatprep.mubr.msk.f32.mxu0 %vm705_vm0, %v1449_v8  ;;  %v653_v9 = vpop.permute.xlu1 %652 }
 0x136   : > { %v3448_v18 = vpop.eup %3447  ;;  %v1173_v20 = vmul.f32 %v1149_v12, %v1077_v7  ;;  %3227 = vmatpush1.bf16.msra.mxu1 %v3226_v14 }
 0x137   : > { %v3450_v21 = vpop.eup %3449  ;;  %v1152_v15 = vadd.f32 1.0, %v3448_v18  ;;  %v4107_v24 = vpop.f32.mrb[28].mxu0  ;;  %3228 = vmatprep.subr.bf16.mxu1 %v3520_v63 }
 0x138   : > { %v1151_v25 = vadd.f32 1.0, %v3450_v21  ;;  %v4110_v19 = vpop.f32.mrb[29].mxu0  ;;  %v3229_v23 = vpack.c.bf16 %v1174_v16, %v1173_v20  ;;  %v1218_v3 = vpop.permute.xlu0 %1217  ;;  %v1001_v21 = vadd.f32 %v4098_v5, %v648_v1 }
 0x139   : > { %v1176_v26 = vmul.f32 %v1152_v15, %v1080_v22  ;;  %v1223_v10 = vpop.permute.xlu1 %1222 }
 0x13a   : > { %v3452_v27 = vpop.eup %3451  ;;  %v1175_v28 = vmul.f32 %v1151_v25, %v1079_v17  ;;  %3230 = vmatpush1.bf16.msra.mxu1 %v3229_v23 }
 0x13b   : > { %v3454_v29 = vpop.eup %3453  ;;  %v1154_v32 = vadd.f32 1.0, %v3452_v27  ;;  %v4112_v33 = vpop.f32.mrb[30].mxu0  ;;  %3231 = vmatprep.subr.bf16.mxu1 %v3520_v63  ;;  %v1006_v27 = vadd.f32 %v4094_v0, %v653_v9 }
 0x13c   : > { %v1153_v36 = vadd.f32 1.0, %v3454_v29  ;;  %v4115_v37 = vpop.f32.mrb[31].mxu0  ;;  %v3232_v38 = vpack.c.bf16 %v1176_v26, %v1175_v28  ;;  %v658_v7 = vpop.permute.xlu0 %657 }
 0x13d   : > { %v1178_v39 = vmul.f32 %v1154_v32, %v1082_v31  ;;  %v663_v12 = vpop.permute.xlu1 %662 }
 0x13e   : > { %v1177_v40 = vmul.f32 %v1153_v36, %v1081_v34  ;;  %3233 = vmatpush1.bf16.msra.mxu1 %v3232_v38  ;;  %v1011_v36 = vadd.f32 %v4105_v13, %v658_v7 }
 0x13f   : > { %v4117_v41 = vpop.f32.mrb[32].mxu0  ;;  %3234 = vmatprep.subr.bf16.mxu1 %v3520_v63  ;;  %v1181_v63 = vld [vmem:[%s4635_s3 + $0x10] sm:$0xff] }
 0x140   : > { %v4120_v42 = vpop.f32.mrb[33].mxu0  ;;  %v3235_v30 = vpack.c.bf16 %v1178_v39, %v1177_v40  ;;  %v1228_v14 = vpop.permute.xlu0 %1227 }
 0x141   : > { %v1233_v16 = vpop.permute.xlu1 %1232 }
 0x142   : > { %3236 = vmatpush1.bf16.msra.mxu1 %v3235_v30 }
 0x143   : > { %v4125_v35 = vpop.f32.mrb[34].mxu0 }
 0x144   : > { %v4130_v45 = vpop.f32.mrb[35].mxu0  ;;  %v668_v18 = vpop.permute.xlu0 %667 }
 0x145   : > { %1377 = vmatmul.mubr.f32.vlgmr.msra.gmra.mrb[0].mxu1 %v1179_v43  ;;  %v673_v17 = vpop.permute.xlu1 %672 }
 0x146   : > { %2747 = vmatprep.mubr.msk.f32.mxu1 %vm1275_vm1, %v1182_v44  ;;  %v1016_v44 = vadd.f32 %v4101_v11, %v663_v12 }
 0x148   : > { %v1238_v23 = vpop.permute.xlu0 %1237 }
 0x149   : > { %1382 = vmatmul.mubr.f32.gmra.mrb[2].mxu1 %v1181_v63  ;;  %v1243_v32 = vpop.permute.xlu1 %1242 }
 0x14a   : > { %2748 = vmatprep.mubr.msk.f32.mxu1 %vm1275_vm1, %v1184_v46 }
 0x14c   : > { %v678_v30 = vpop.permute.xlu0 %677 }
 0x14d   : > { %1387 = vmatmul.mubr.f32.gmra.mrb[4].mxu1 %v1183_v49  ;;  %v683_v0 = vpop.permute.xlu1 %682 }
 0x14e   : > { %2749 = vmatprep.mubr.msk.f32.mxu1 %vm1275_vm1, %v1186_v50  ;;  %v1036_v9 = vadd.f32 %v4112_v33, %v683_v0  ;;  %v1457_v0 = vld [vmem:[%s4637_s5 + $0x40] sm:$0xff] }
 0x150   : > { %v1248_v50 = vpop.permute.xlu0 %1247 }
 0x151   : > { %1392 = vmatmul.mubr.f32.gmra.mrb[6].mxu1 %v1185_v52 }
 0x152   : > { %2750 = vmatprep.mubr.msk.f32.mxu1 %vm1275_vm1, %v1188_v54  ;;  %v1021_v54 = vadd.f32 %v4110_v19, %v668_v18 }
 0x155   : > { %1397 = vmatmul.mubr.f32.gmra.mrb[8].mxu1 %v1187_v48 }
 0x156   : > { %2751 = vmatprep.mubr.msk.f32.mxu1 %vm1275_vm1, %v1190_v55 }
 0x159   : > { %1402 = vmatmul.mubr.f32.gmra.mrb[10].mxu1 %v1189_v51 }
 0x15a   : > { %2752 = vmatprep.mubr.msk.f32.mxu1 %vm1275_vm1, %v1192_v56  ;;  %v1253_v56 = vpop.permute.xlu1 %1252 }
 0x15d   : > { %1407 = vmatmul.mubr.f32.gmra.mrb[12].mxu1 %v1191_v57 }
 0x15e   : > { %2753 = vmatprep.mubr.msk.f32.mxu1 %vm1275_vm1, %v1194_v58  ;;  %v1026_v58 = vadd.f32 %v4107_v24, %v673_v17 }
 0x161   : > { %1412 = vmatmul.mubr.f32.gmra.mrb[14].mxu1 %v1193_v59 }
 0x162   : > { %2754 = vmatprep.mubr.msk.f32.mxu1 %vm1275_vm1, %v1196_v47  ;;  %v688_v47 = vpop.permute.xlu0 %687 }
 0x165   : > { %1417 = vmatmul.mubr.f32.gmra.mrb[16].mxu1 %v1195_v53 }
 0x166   : > { %2755 = vmatprep.mubr.msk.f32.mxu1 %vm1275_vm1, %v1198_v60  ;;  %v1258_v8 = vpop.permute.xlu0 %1257 }
 0x169   : > { %1422 = vmatmul.mubr.f32.gmra.mrb[18].mxu1 %v1197_v62  ;;  %v1031_v62 = vadd.f32 %v4115_v37, %v678_v30 }
 0x16a   : > { %2756 = vmatprep.mubr.msk.f32.mxu1 %vm1275_vm1, %v1200_v2 }
 0x16d   : > { %1427 = vmatmul.mubr.f32.gmra.mrb[20].mxu1 %v1199_v4 }
 0x16e   : > { %2757 = vmatprep.mubr.msk.f32.mxu1 %vm1275_vm1, %v1202_v6  ;;  %v693_v6 = vpop.permute.xlu1 %692 }
 0x171   : > { %1432 = vmatmul.mubr.f32.gmra.mrb[22].mxu1 %v1201_v61 }
 0x172   : > { %v1263_v7 = vpop.permute.xlu1 %1262 }
 0x176   : > { %v703_v33 = vpop.permute.xlu1 %702 }
 0x218   : > { %v1378_v20 = vpop.f32.mrb[0].mxu1 }
 0x219   : > { %v1379_v22 = vadd.f32 %v1378_v20, %v1218_v3  ;;  %v1380_v15 = vpop.f32.mrb[1].mxu1  ;;  %v698_v20 = vpop.permute.xlu0 %697 }
 0x21a   : > { %v1046_v15 = vadd.f32 %v4117_v41, %v693_v6  ;;  %v2236_v6 = vld [vmem:[%s4641_s9 + $0x8] sm:$0xff] }
 0x21b   : > { %v1437_v25 = vadd.f32 %v1379_v22, %v1001_v21 }
 0x21c   : > { %v1383_v26 = vpop.f32.mrb[2].mxu1 }
 0x21d   : > { %v1384_v28 = vadd.f32 %v1383_v26, %v1223_v10  ;;  %v1385_v29 = vpop.f32.mrb[3].mxu1  ;;  %v1268_v26 = vpop.permute.xlu0 %1267 }
 0x21f   : > { %v1438_v31 = vadd.f32 %v1384_v28, %v1006_v27  ;;  %v1051_v28 = vadd.f32 %v4130_v45, %v698_v20  ;;  %v1450_v45 = vld [vmem:[%s4637_s5 + $0x8] sm:$0xff] }
 0x220   : > { %v1388_v34 = vpop.f32.mrb[4].mxu1 }
 0x221   : > { %v1389_v38 = vadd.f32 %v1388_v34, %v1228_v14  ;;  %v1390_v39 = vpop.f32.mrb[5].mxu1  ;;  %v3237_v40 = vpack.c.bf16 %v1438_v31, %v1437_v25  ;;  %v1041_v14 = vadd.f32 %v4120_v42, %v688_v47  ;;  %v1273_v34 = vpop.permute.xlu1 %1272  ;;  %v1471_v47 = vld [vmem:[%s4637_s5 + $0xb0] sm:$0xff] }
 0x223   : > { %v1439_v5 = vadd.f32 %v1389_v38, %v1011_v36  ;;  %3238 = vmatprep.subr.bf16.mxu0 %v3237_v40  ;;  %v1056_v38 = vadd.f32 %v4125_v35, %v703_v33  ;;  %v1452_v35 = vld [vmem:[%s4637_s5 + $0x18] sm:$0xff] }
 0x224   : > { %v1393_v43 = vpop.f32.mrb[6].mxu1  ;;  %3240 = vmatpush3.bf16.msra.mxu0 %v3237_v40 }
 0x225   : > { %v1394_v63 = vadd.f32 %v1393_v43, %v1233_v16  ;;  %v1395_v46 = vpop.f32.mrb[7].mxu1  ;;  %v1453_v43 = vld [vmem:[%s4637_s5 + $0x20] sm:$0xff] }
 0x226   : > { %v1456_v46 = vld [vmem:[%s4637_s5 + $0x38] sm:$0xff] }
 0x227   : > { %v1440_v49 = vadd.f32 %v1394_v63, %v1016_v44  ;;  %v1454_v44 = vld [vmem:[%s4637_s5 + $0x28] sm:$0xff]  ;;  %v1455_v63 = vld [vmem:[%s4637_s5 + $0x30] sm:$0xff] }
 0x228   : > { %v1398_v52 = vpop.f32.mrb[8].mxu1 }
 0x229   : > { %v1399_v48 = vadd.f32 %v1398_v52, %v1238_v23  ;;  %v1400_v13 = vpop.f32.mrb[9].mxu1  ;;  %v3241_v55 = vpack.c.bf16 %v1440_v49, %v1439_v5  ;;  %v1451_v5 = vld [vmem:[%s4637_s5 + $0x10] sm:$0xff]  ;;  %v1458_v49 = vld [vmem:[%s4637_s5 + $0x48] sm:$0xff]  ;;  %v1460_v52 = vld [vmem:[%s4637_s5 + $0x58] sm:$0xff] }
 0x22a   : > { %v1463_v13 = vld [vmem:[%s4637_s5 + $0x70] sm:$0xff] }
 0x22b   : > { %v1441_v51 = vadd.f32 %v1399_v48, %v1021_v54  ;;  %3242 = vmatprep.subr.bf16.mxu0 %v3241_v55  ;;  %v1461_v54 = vld [vmem:[%s4637_s5 + $0x60] sm:$0xff]  ;;  %v1462_v48 = vld [vmem:[%s4637_s5 + $0x68] sm:$0xff] }
 0x22c   : > { %v1403_v57 = vpop.f32.mrb[10].mxu1  ;;  %3244 = vmatpush3.bf16.msra.mxu0 %v3241_v55  ;;  %v1464_v55 = vld [vmem:[%s4637_s5 + $0x78] sm:$0xff] }
 0x22d   : > { %v1404_v59 = vadd.f32 %v1403_v57, %v1243_v32  ;;  %v1405_v11 = vpop.f32.mrb[11].mxu1  ;;  %v1467_v57 = vld [vmem:[%s4637_s5 + $0x90] sm:$0xff] }
 0x22e   : > { %v1470_v11 = vld [vmem:[%s4637_s5 + $0xa8] sm:$0xff] }
 0x22f   : > { %v1442_v53 = vadd.f32 %v1404_v59, %v1026_v58  ;;  %v1468_v58 = vld [vmem:[%s4637_s5 + $0x98] sm:$0xff]  ;;  %v1469_v59 = vld [vmem:[%s4637_s5 + $0xa0] sm:$0xff] }
 0x230   : > { %v1408_v60 = vpop.f32.mrb[12].mxu1 }
 0x231   : > { %v1409_v2 = vadd.f32 %v1408_v60, %v1248_v50  ;;  %v1410_v4 = vpop.f32.mrb[13].mxu1  ;;  %v3245_v19 = vpack.c.bf16 %v1442_v53, %v1441_v51  ;;  %v1459_v50 = vld [vmem:[%s4637_s5 + $0x50] sm:$0xff]  ;;  %v1465_v51 = vld [vmem:[%s4637_s5 + $0x80] sm:$0xff]  ;;  %v1472_v53 = vld [vmem:[%s4637_s5 + $0xb8] sm:$0xff] }
 0x232   : > { %v1473_v60 = vld [vmem:[%s4637_s5 + $0xc0] sm:$0xff]  ;;  %v1476_v4 = vld [vmem:[%s4637_s5 + $0xd8] sm:$0xff] }
 0x233   : > { %v1443_v61 = vadd.f32 %v1409_v2, %v1031_v62  ;;  %3246 = vmatprep.subr.bf16.mxu0 %v3245_v19  ;;  %v1474_v62 = vld [vmem:[%s4637_s5 + $0xc8] sm:$0xff]  ;;  %v1475_v2 = vld [vmem:[%s4637_s5 + $0xd0] sm:$0xff] }
 0x234   : > { %v1413_v1 = vpop.f32.mrb[14].mxu1  ;;  %3248 = vmatpush3.bf16.msra.mxu0 %v3245_v19  ;;  %v2014_v19 = vld [vmem:[%s4639_s7] sm:$0xff] }
 0x235   : > { %v1414_v3 = vadd.f32 %v1413_v1, %v1253_v56  ;;  %v1415_v24 = vpop.f32.mrb[15].mxu1  ;;  %v1466_v56 = vld [vmem:[%s4637_s5 + $0x88] sm:$0xff] }
 0x236   : > { %v2242_v24 = vld [vmem:[%s4641_s9 + $0x38] sm:$0xff] }
 0x237   : > { %v1444_v10 = vadd.f32 %v1414_v3, %v1036_v9  ;;  %v2237_v9 = vld [vmem:[%s4641_s9 + $0x10] sm:$0xff]  ;;  %v2240_v3 = vld [vmem:[%s4641_s9 + $0x28] sm:$0xff] }
 0x238   : > { %v1418_v12 = vpop.f32.mrb[16].mxu1 }
 0x239   : > { %v1419_v16 = vadd.f32 %v1418_v12, %v1258_v8  ;;  %v1420_v37 = vpop.f32.mrb[17].mxu1  ;;  %v3249_v18 = vpack.c.bf16 %v1444_v10, %v1443_v61  ;;  %v2238_v61 = vld [vmem:[%s4641_s9 + $0x18] sm:$0xff]  ;;  %v2235_v8 = vld [vmem:[%s4641_s9] sm:$0xff] }
 0x23a   : > { %v3293_v1 = vpack.c.bf16 %v2238_v61, %v2236_v6  ;;  %v3295_v10 = vpack.c.bf16 %v2237_v9, %v2235_v8  ;;  %v2239_v12 = vld [vmem:[%s4641_s9 + $0x20] sm:$0xff]  ;;  %v2246_v37 = vld [vmem:[%s4641_s9 + $0x58] sm:$0xff] }
 0x23b   : > { %v1445_v21 = vadd.f32 %v1419_v16, %v1041_v14  ;;  %3250 = vmatprep.subr.bf16.mxu0 %v3249_v18  ;;  %v2241_v14 = vld [vmem:[%s4641_s9 + $0x30] sm:$0xff]  ;;  %v2244_v16 = vld [vmem:[%s4641_s9 + $0x48] sm:$0xff] }
 0x23c   : > { %v1423_v22 = vpop.f32.mrb[18].mxu1  ;;  %3252 = vmatpush3.bf16.msra.mxu0 %v3249_v18  ;;  %3294 = vmatprep.subr.bf16.mxu1 %v3293_v1  ;;  %v3299_v18 = vpack.c.bf16 %v2241_v14, %v2239_v12  ;;  %v3301_v20 = vpack.c.bf16 %v2246_v37, %v2244_v16 }
 0x23d   : > { %v1424_v17 = vadd.f32 %v1423_v22, %v1263_v7  ;;  %v1425_v25 = vpop.f32.mrb[19].mxu1  ;;  %v3297_v7 = vpack.c.bf16 %v2242_v24, %v2240_v3  ;;  %3296 = vmatpush1.bf16.msra.mxu1 %v3295_v10  ;;  %v2245_v22 = vld [vmem:[%s4641_s9 + $0x50] sm:$0xff] }
 0x23f   : > { %v1446_v23 = vadd.f32 %v1424_v17, %v1046_v15  ;;  %3298 = vmatprep.subr.bf16.mxu1 %v3297_v7  ;;  %v2248_v15 = vld [vmem:[%s4641_s9 + $0x68] sm:$0xff]  ;;  %v2250_v17 = vld [vmem:[%s4641_s9 + $0x78] sm:$0xff] }
 0x240   : > { %v1428_v27 = vpop.f32.mrb[20].mxu1  ;;  %v3305_v33 = vpack.c.bf16 %v2250_v17, %v2248_v15 }
 0x241   : > { %v1429_v29 = vadd.f32 %v1428_v27, %v1268_v26  ;;  %v1430_v42 = vpop.f32.mrb[21].mxu1  ;;  %v3253_v31 = vpack.c.bf16 %v1446_v23, %v1445_v21  ;;  %v2243_v21 = vld [vmem:[%s4641_s9 + $0x40] sm:$0xff]  ;;  %3300 = vmatpush1.bf16.msra.mxu1 %v3299_v18  ;;  %v2249_v26 = vld [vmem:[%s4641_s9 + $0x70] sm:$0xff]  ;;  %v2252_v27 = vld [vmem:[%s4641_s9 + $0x88] sm:$0xff] }
 0x242   : > { %v3303_v25 = vpack.c.bf16 %v2245_v22, %v2243_v21  ;;  %3302 = vmatprep.subr.bf16.mxu1 %v3301_v20  ;;  %v2247_v23 = vld [vmem:[%s4641_s9 + $0x60] sm:$0xff] }
 0x243   : > { %v1447_v32 = vadd.f32 %v1429_v29, %v1051_v28  ;;  %3254 = vmatprep.subr.bf16.mxu0 %v3253_v31  ;;  %v2254_v28 = vld [vmem:[%s4641_s9 + $0x98] sm:$0xff]  ;;  %v3307_v29 = vpack.c.bf16 %v2249_v26, %v2247_v23 }
 0x244   : > { %v1433_v36 = vpop.f32.mrb[22].mxu1  ;;  %3256 = vmatpush3.bf16.msra.mxu0 %v3253_v31  ;;  %v3309_v42 = vpack.c.bf16 %v2254_v28, %v2252_v27  ;;  %v2251_v31 = vld [vmem:[%s4641_s9 + $0x80] sm:$0xff] }
 0x245   : > { %v1434_v39 = vadd.f32 %v1433_v36, %v1273_v34  ;;  %v1435_v41 = vpop.f32.mrb[23].mxu1  ;;  %3304 = vmatpush1.bf16.msra.mxu1 %v3303_v25  ;;  %v2256_v34 = vld [vmem:[%s4641_s9 + $0xa8] sm:$0xff]  ;;  %v2258_v36 = vld [vmem:[%s4641_s9 + $0xb8] sm:$0xff] }
 0x246   : > { %3306 = vmatprep.subr.bf16.mxu1 %v3305_v33  ;;  %v2255_v41 = vld [vmem:[%s4641_s9 + $0xa0] sm:$0xff] }
 0x247   : > { %v1448_v40 = vadd.f32 %v1434_v39, %v1056_v38  ;;  %v3313_v39 = vpack.c.bf16 %v2258_v36, %v2256_v34 }
 0x249   : > { %v3257_v30 = vpack.c.bf16 %v1448_v40, %v1447_v32  ;;  %v2253_v32 = vld [vmem:[%s4641_s9 + $0x90] sm:$0xff]  ;;  %3308 = vmatpush1.bf16.msra.mxu1 %v3307_v29 }
 0x24a   : > { %v3311_v38 = vpack.c.bf16 %v2253_v32, %v2251_v31  ;;  %3310 = vmatprep.subr.bf16.mxu1 %v3309_v42  ;;  %v2257_v40 = vld [vmem:[%s4641_s9 + $0xb0] sm:$0xff] }
 0x24b   : > { %3258 = vmatprep.subr.bf16.mxu0 %v3257_v30 }
 0x24c   : > { %3260 = vmatpush3.bf16.msra.mxu0 %v3257_v30  ;;  %v2260_v30 = vld [vmem:[%s4641_s9 + $0xc8] sm:$0xff] }
 0x24d   : > { %3312 = vmatpush1.bf16.msra.mxu1 %v3311_v38 }
 0x24e   : > { %3314 = vmatprep.subr.bf16.mxu1 %v3313_v39 }
 0x24f   : > { %3036 = vmatmul.mubr.msk.f32.vlgmr.msra.gmra.mrb[36].mxu0 %vm705_vm0, %v1450_v45  ;;  %v2262_v45 = vld [vmem:[%s4641_s9 + $0xd8] sm:$0xff] }
 0x250   : > { %3038 = vmatprep.mubr.msk.f32.mxu0 %vm705_vm0, %v1451_v5  ;;  %v3315_v5 = vpack.c.bf16 %v2257_v40, %v2255_v41 }
 0x252   : > { %3316 = vmatpush1.bf16.msra.mxu1 %v3315_v5 }
 0x253   : > { %3039 = vmatmul.mubr.msk.f32.gmra.mrb[38].mxu0 %vm705_vm0, %v1452_v35  ;;  %v3317_v35 = vpack.c.bf16 %v2262_v45, %v2260_v30 }
 0x254   : > { %3041 = vmatprep.mubr.msk.f32.mxu0 %vm705_vm0, %v1453_v43  ;;  %v2259_v43 = vld [vmem:[%s4641_s9 + $0xc0] sm:$0xff] }
 0x255   : > { %3318 = vmatprep.subr.bf16.mxu1 %v3317_v35 }
 0x257   : > { %3042 = vmatmul.mubr.msk.f32.gmra.mrb[40].mxu0 %vm705_vm0, %v1454_v44  ;;  %v2261_v44 = vld [vmem:[%s4641_s9 + $0xd0] sm:$0xff] }
 0x258   : > { %3044 = vmatprep.mubr.msk.f32.mxu0 %vm705_vm0, %v1455_v63  ;;  %v3319_v63 = vpack.c.bf16 %v2261_v44, %v2259_v43 }
 0x25a   : > { %3320 = vmatpush1.bf16.msra.mxu1 %v3319_v63 }
 0x25b   : > { %3045 = vmatmul.mubr.msk.f32.gmra.mrb[42].mxu0 %vm705_vm0, %v1456_v46  ;;  %v1513_v46 = vpop.permute.xlu1 %1512 }
 0x25c   : > { %3047 = vmatprep.mubr.msk.f32.mxu0 %vm705_vm0, %v1457_v0  ;;  %v1508_v0 = vpop.permute.xlu0 %1507 }
 0x25f   : > { %3048 = vmatmul.mubr.msk.f32.gmra.mrb[44].mxu0 %vm705_vm0, %v1458_v49  ;;  %v1523_v49 = vpop.permute.xlu1 %1522 }
 0x260   : > { %3050 = vmatprep.mubr.msk.f32.mxu0 %vm705_vm0, %v1459_v50  ;;  %v1518_v50 = vpop.permute.xlu0 %1517 }
 0x263   : > { %3051 = vmatmul.mubr.msk.f32.gmra.mrb[46].mxu0 %vm705_vm0, %v1460_v52  ;;  %v1533_v52 = vpop.permute.xlu1 %1532 }
 0x264   : > { %3053 = vmatprep.mubr.msk.f32.mxu0 %vm705_vm0, %v1461_v54  ;;  %v1528_v54 = vpop.permute.xlu0 %1527 }
 0x267   : > { %3054 = vmatmul.mubr.msk.f32.gmra.mrb[48].mxu0 %vm705_vm0, %v1462_v48 }
 0x268   : > { %3056 = vmatprep.mubr.msk.f32.mxu0 %vm705_vm0, %v1463_v13 }
 0x26b   : > { %3057 = vmatmul.mubr.msk.f32.gmra.mrb[50].mxu0 %vm705_vm0, %v1464_v55 }
 0x26c   : > { %3059 = vmatprep.mubr.msk.f32.mxu0 %vm705_vm0, %v1465_v51 }
 0x26f   : > { %3060 = vmatmul.mubr.msk.f32.gmra.mrb[52].mxu0 %vm705_vm0, %v1466_v56 }
 0x270   : > { %3062 = vmatprep.mubr.msk.f32.mxu0 %vm705_vm0, %v1467_v57  ;;  %v1543_v57 = vpop.permute.xlu1 %1542 }
 0x273   : > { %3063 = vmatmul.mubr.msk.f32.gmra.mrb[54].mxu0 %vm705_vm0, %v1468_v58 }
 0x274   : > { %3065 = vmatprep.mubr.msk.f32.mxu0 %vm705_vm0, %v1469_v59  ;;  %v1553_v61 = vpop.permute.xlu1 %1552 }
 0x277   : > { %3066 = vmatmul.mubr.msk.f32.gmra.mrb[56].mxu0 %vm705_vm0, %v1470_v11  ;;  %v1538_v11 = vpop.permute.xlu0 %1537 }
 0x278   : > { %3068 = vmatprep.mubr.msk.f32.mxu0 %vm705_vm0, %v1471_v47  ;;  %v1563_v18 = vpop.permute.xlu1 %1562 }
 0x27b   : > { %3069 = vmatmul.mubr.msk.f32.gmra.mrb[58].mxu0 %vm705_vm0, %v1472_v53  ;;  %v1548_v1 = vpop.permute.xlu0 %1547 }
 0x27c   : > { %3071 = vmatprep.mubr.msk.f32.mxu0 %vm705_vm0, %v1473_v60  ;;  %v1573_v35 = vpop.permute.xlu1 %1572 }
 0x27f   : > { %3072 = vmatmul.mubr.msk.f32.gmra.mrb[60].mxu0 %vm705_vm0, %v1474_v62  ;;  %v1558_v17 = vpop.permute.xlu0 %1557 }
 0x280   : > { %3074 = vmatprep.mubr.msk.f32.mxu0 %vm705_vm0, %v1475_v2 }
 0x283   : > { %3075 = vmatmul.mubr.msk.f32.gmra.mrb[62].mxu0 %vm705_vm0, %v1476_v4 }
 0x284   : > { %3109 = vmatprep.mubr.f32.mxu0 %v2014_v19 }
 0x322   : > { %v3037_v48 = vpop.f32.mrb[36].mxu0 }
 0x323   : > { %v1801_v13 = vadd.f32 %v3037_v48, %v1513_v46  ;;  %v1795_v55 = vpop.f32.mrb[37].mxu0  ;;  %v1568_v46 = vpop.permute.xlu0 %1567 }
 0x324   : > { %v1796_v51 = vadd.f32 %v1795_v55, %v1508_v0 }
 0x325   : > { %v1951_v56 = vmul.f32 0.70710677, %v1801_v13  ;;  %v1935_v20 = vmul.f32 0.5, %v1801_v13 }
 0x326   : > { %v1950_v58 = vmul.f32 0.70710677, %v1796_v51  ;;  %v3040_v59 = vpop.f32.mrb[38].mxu0  ;;  %v1934_v25 = vmul.f32 0.5, %v1796_v51 }
 0x327   : > { %3455 = verf.f32 %v1951_v56  ;;  %v1811_v47 = vadd.f32 %v3040_v59, %v1523_v49  ;;  %v1805_v53 = vpop.f32.mrb[39].mxu0 }
 0x328   : > { %3457 = verf.f32 %v1950_v58  ;;  %v1806_v60 = vadd.f32 %v1805_v53, %v1518_v50 }
 0x329   : > { %v1953_v62 = vmul.f32 0.70710677, %v1811_v47  ;;  %v1937_v34 = vmul.f32 0.5, %v1811_v47 }
 0x32a   : > { %v1952_v2 = vmul.f32 0.70710677, %v1806_v60  ;;  %v3043_v4 = vpop.f32.mrb[40].mxu0  ;;  %v1936_v38 = vmul.f32 0.5, %v1806_v60 }
 0x32b   : > { %3459 = verf.f32 %v1953_v62  ;;  %v1821_v19 = vadd.f32 %v3043_v4, %v1533_v52  ;;  %v1815_v6 = vpop.f32.mrb[41].mxu0 }
 0x32c   : > { %3461 = verf.f32 %v1952_v2  ;;  %v1816_v8 = vadd.f32 %v1815_v6, %v1528_v54  ;;  %v1583_v2 = vpop.permute.xlu1 %1582 }
 0x32d   : > { %v1955_v9 = vmul.f32 0.70710677, %v1821_v19  ;;  %v1939_v52 = vmul.f32 0.5, %v1821_v19 }
 0x32e   : > { %v1954_v3 = vmul.f32 0.70710677, %v1816_v8  ;;  %v3046_v24 = vpop.f32.mrb[42].mxu0  ;;  %v1938_v48 = vmul.f32 0.5, %v1816_v8 }
 0x32f   : > { %3463 = verf.f32 %v1955_v9  ;;  %v4417_v10 = vadd.f32 %v3046_v24, %v1543_v57  ;;  %v1825_v7 = vpop.f32.mrb[43].mxu0 }
 0x330   : > { %3465 = verf.f32 %v1954_v3  ;;  %v4419_v12 = vadd.f32 %v1825_v7, %v1538_v11 }
 0x331   : > { %v3456_v14 = vpop.eup %3455  ;;  %v1957_v16 = vmul.f32 0.70710677, %v4417_v10  ;;  %v1941_v4 = vmul.f32 0.5, %v4417_v10 }
 0x332   : > { %v3458_v37 = vpop.eup %3457  ;;  %v1983_v21 = vadd.f32 1.0, %v3456_v14  ;;  %v1956_v22 = vmul.f32 0.70710677, %v4419_v12  ;;  %v3049_v15 = vpop.f32.mrb[44].mxu0  ;;  %v1940_v6 = vmul.f32 0.5, %v4419_v12 }
 0x333   : > { %v1982_v33 = vadd.f32 1.0, %v3458_v37  ;;  %3467 = verf.f32 %v1957_v16  ;;  %v4423_v23 = vadd.f32 %v3049_v15, %v1553_v61  ;;  %v1835_v26 = vpop.f32.mrb[45].mxu0 }
 0x334   : > { %v1999_v27 = vmul.f32 %v1983_v21, %v1935_v20  ;;  %3469 = verf.f32 %v1956_v22  ;;  %v4425_v28 = vadd.f32 %v1835_v26, %v1548_v1  ;;  %v1578_v1 = vpop.permute.xlu0 %1577 }
 0x335   : > { %v3460_v29 = vpop.eup %3459  ;;  %v1998_v42 = vmul.f32 %v1982_v33, %v1934_v25  ;;  %v1959_v31 = vmul.f32 0.70710677, %v4423_v23  ;;  %v1943_v21 = vmul.f32 0.5, %v4423_v23 }
 0x336   : > { %v3462_v32 = vpop.eup %3461  ;;  %v1985_v36 = vadd.f32 1.0, %v3460_v29  ;;  %v1958_v39 = vmul.f32 0.70710677, %v4425_v28  ;;  %v3052_v41 = vpop.f32.mrb[46].mxu0  ;;  %v1942_v15 = vmul.f32 0.5, %v4425_v28 }
 0x337   : > { %v1984_v40 = vadd.f32 1.0, %v3462_v32  ;;  %3471 = verf.f32 %v1959_v31  ;;  %v4429_v30 = vadd.f32 %v3052_v41, %v1563_v18  ;;  %v1845_v45 = vpop.f32.mrb[47].mxu0  ;;  %v3261_v5 = vpack.c.bf16 %v1999_v27, %v1998_v42 }
 0x338   : > { %v2001_v43 = vmul.f32 %v1985_v36, %v1937_v34  ;;  %3473 = verf.f32 %v1958_v39  ;;  %v4431_v44 = vadd.f32 %v1845_v45, %v1558_v17 }
 0x339   : > { %v3464_v63 = vpop.eup %3463  ;;  %v2000_v0 = vmul.f32 %v1984_v40, %v1936_v38  ;;  %v1961_v49 = vmul.f32 0.70710677, %v4429_v30  ;;  %3262 = vmatprep.subr.bf16.mxu0 %v3261_v5  ;;  %v1945_v42 = vmul.f32 0.5, %v4429_v30 }
 0x33a   : > { %v3466_v50 = vpop.eup %3465  ;;  %v1987_v54 = vadd.f32 1.0, %v3464_v63  ;;  %v1960_v13 = vmul.f32 0.70710677, %v4431_v44  ;;  %v3055_v55 = vpop.f32.mrb[48].mxu0  ;;  %3264 = vmatpush3.bf16.msra.mxu0 %v3261_v5  ;;  %v1944_v23 = vmul.f32 0.5, %v4431_v44 }
 0x33b   : > { %v1986_v51 = vadd.f32 1.0, %v3466_v50  ;;  %3475 = verf.f32 %v1961_v49  ;;  %v1861_v56 = vadd.f32 %v3055_v55, %v1573_v35  ;;  %v1855_v57 = vpop.f32.mrb[49].mxu0  ;;  %v3265_v58 = vpack.c.bf16 %v2001_v43, %v2000_v0  ;;  %v2015_v55 = vld [vmem:[%s4639_s7 + $0x8] sm:$0xff] }
 0x33c   : > { %v2003_v59 = vmul.f32 %v1987_v54, %v1939_v52  ;;  %3477 = verf.f32 %v1960_v13  ;;  %v1856_v11 = vadd.f32 %v1855_v57, %v1568_v46  ;;  %v2018_v57 = vld [vmem:[%s4639_s7 + $0x20] sm:$0xff] }
 0x33d   : > { %v3468_v47 = vpop.eup %3467  ;;  %v2002_v53 = vmul.f32 %v1986_v51, %v1938_v48  ;;  %v1963_v60 = vmul.f32 0.70710677, %v1861_v56  ;;  %3266 = vmatprep.subr.bf16.mxu0 %v3265_v58  ;;  %v1947_v41 = vmul.f32 0.5, %v1861_v56  ;;  %v2016_v51 = vld [vmem:[%s4639_s7 + $0x10] sm:$0xff]  ;;  %v2017_v56 = vld [vmem:[%s4639_s7 + $0x18] sm:$0xff] }
 0x33e   : > { %v3470_v62 = vpop.eup %3469  ;;  %v1989_v19 = vadd.f32 1.0, %v3468_v47  ;;  %v1962_v61 = vmul.f32 0.70710677, %v1856_v11  ;;  %v3058_v8 = vpop.f32.mrb[50].mxu0  ;;  %3268 = vmatpush3.bf16.msra.mxu0 %v3265_v58  ;;  %v1946_v45 = vmul.f32 0.5, %v1856_v11  ;;  %v2019_v58 = vld [vmem:[%s4639_s7 + $0x28] sm:$0xff] }
 0x33f   : > { %v1988_v9 = vadd.f32 1.0, %v3470_v62  ;;  %3479 = verf.f32 %v1963_v60  ;;  %v1871_v3 = vadd.f32 %v3058_v8, %v1583_v2  ;;  %v1865_v24 = vpop.f32.mrb[51].mxu0  ;;  %v3269_v7 = vpack.c.bf16 %v2003_v59, %v2002_v53  ;;  %v2020_v59 = vld [vmem:[%s4639_s7 + $0x30] sm:$0xff]  ;;  %v2021_v11 = vld [vmem:[%s4639_s7 + $0x38] sm:$0xff]  ;;  %v2022_v47 = vld [vmem:[%s4639_s7 + $0x40] sm:$0xff] }
 0x340   : > { %v2005_v14 = vmul.f32 %v1989_v19, %v1941_v4  ;;  %3481 = verf.f32 %v1962_v61  ;;  %v1866_v16 = vadd.f32 %v1865_v24, %v1578_v1  ;;  %v2023_v53 = vld [vmem:[%s4639_s7 + $0x48] sm:$0xff]  ;;  %v2024_v60 = vld [vmem:[%s4639_s7 + $0x50] sm:$0xff]  ;;  %v2025_v62 = vld [vmem:[%s4639_s7 + $0x58] sm:$0xff]  ;;  %v3521_v1 = vmov 0.0  }
 0x341   : > { %v3472_v37 = vpop.eup %3471  ;;  %v2004_v18 = vmul.f32 %v1988_v9, %v1940_v6  ;;  %v1965_v20 = vmul.f32 0.70710677, %v1871_v3  ;;  %3270 = vmatprep.subr.bf16.mxu0 %v3269_v7  ;;  %v1949_v0 = vmul.f32 0.5, %v1871_v3  ;;  %v2264_v2 = vld [vmem:[%s4641_s9 + $0xe8] sm:$0xff]  ;;  %v2266_v4 = vld [vmem:[%s4641_s9 + $0xf8] sm:$0xff]  ;;  %v2263_v6 = vld [vmem:[%s4641_s9 + $0xe0] sm:$0xff]  ;;  %2343 = vmatprep.mubr.f32.mxu1 %v3521_v1 }
 0x342   : > { %v3474_v10 = vpop.eup %3473  ;;  %v1991_v12 = vadd.f32 1.0, %v3472_v37  ;;  %v1964_v22 = vmul.f32 0.70710677, %v1866_v16  ;;  %3272 = vmatpush3.bf16.msra.mxu0 %v3269_v7  ;;  %v1948_v49 = vmul.f32 0.5, %v1866_v16  ;;  %v3321_v19 = vpack.c.bf16 %v2266_v4, %v2264_v2  ;;  %v2265_v61 = vld [vmem:[%s4641_s9 + $0xf0] sm:$0xff]  ;;  %v2476_v9 = vld [vmem:[%s4643_s11] sm:$0xff]  ;;  %v2041_v7 = vpop.permute.xlu1 %2040 }
 0x343   : > { %v1990_v17 = vadd.f32 1.0, %v3474_v10  ;;  %3483 = verf.f32 %v1965_v20  ;;  %v3273_v25 = vpack.c.bf16 %v2005_v14, %v2004_v18  ;;  %v3323_v8 = vpack.c.bf16 %v2265_v61, %v2263_v6  ;;  %v2477_v3 = vld [vmem:[%s4643_s11 + $0x8] sm:$0xff]  ;;  %v1588_v14 = vpop.permute.xlu0 %1587 }
 0x344   : > { %v2007_v33 = vmul.f32 %v1991_v12, %v1943_v21  ;;  %3485 = verf.f32 %v1964_v22  ;;  %3322 = vmatprep.subr.bf16.mxu1 %v3321_v19  ;;  %v3325_v24 = vpack.c.bf16 %v2477_v3, %v2476_v9 }
 0x345   : > { %v3476_v26 = vpop.eup %3475  ;;  %v2006_v27 = vmul.f32 %v1990_v17, %v1942_v15  ;;  %3274 = vmatprep.subr.bf16.mxu0 %v3273_v25  ;;  %3324 = vmatpush1.bf16.msra.mxu1 %v3323_v8  ;;  %v2478_v15 = vld [vmem:[%s4643_s11 + $0x10] sm:$0xff]  ;;  %v2479_v17 = vld [vmem:[%s4643_s11 + $0x18] sm:$0xff] }
 0x346   : > { %v3478_v29 = vpop.eup %3477  ;;  %v1993_v31 = vadd.f32 1.0, %v3476_v26  ;;  %3276 = vmatpush3.bf16.msra.mxu0 %v3273_v25  ;;  %3326 = vmatprep.subr.bf16.mxu1 %v3325_v24  ;;  %v2046_v16 = vpop.permute.xlu1 %2045  ;;  %v3359_v25 = vadd.f32 %v2041_v7, %v1588_v14  ;;  %v2480_v7 = vld [vmem:[%s4643_s11 + $0x20] sm:$0xff]  ;;  %v2481_v14 = vld [vmem:[%s4643_s11 + $0x28] sm:$0xff] }
 0x347   : > { %v1992_v32 = vadd.f32 1.0, %v3478_v29  ;;  %v3277_v34 = vpack.c.bf16 %v2007_v33, %v2006_v27  ;;  %v1593_v37 = vpop.permute.xlu0 %1592  ;;  %v3329_v29 = vpack.c.bf16 %v2479_v17, %v2478_v15  ;;  %v2488_v17 = vld [vmem:[%s4643_s11 + $0x60] sm:$0xff] }
 0x348   : > { %v2009_v36 = vmul.f32 %v1993_v31, %v1945_v42  ;;  %v3357_v42 = vadd.f32 %v2046_v16, %v1593_v37  ;;  %v3333_v16 = vpack.c.bf16 %v2481_v14, %v2480_v7  ;;  %v2482_v37 = vld [vmem:[%s4643_s11 + $0x30] sm:$0xff] }
 0x349   : > { %v3480_v38 = vpop.eup %3479  ;;  %v2008_v28 = vmul.f32 %v1992_v32, %v1944_v23  ;;  %3278 = vmatprep.subr.bf16.mxu0 %v3277_v34 }
 0x34a   : > { %v3482_v39 = vpop.eup %3481  ;;  %v1995_v40 = vadd.f32 1.0, %v3480_v38  ;;  %3280 = vmatpush3.bf16.msra.mxu0 %v3277_v34  ;;  %v2051_v18 = vpop.permute.xlu1 %2050 }
 0x34b   : > { %v1994_v5 = vadd.f32 1.0, %v3482_v39  ;;  %v3281_v35 = vpack.c.bf16 %v2009_v36, %v2008_v28  ;;  %v1598_v20 = vpop.permute.xlu0 %1597 }
 0x34c   : > { %v2011_v43 = vmul.f32 %v1995_v40, %v1947_v41  ;;  %v3363_v38 = vadd.f32 %v2051_v18, %v1598_v20  ;;  %v2484_v20 = vld [vmem:[%s4643_s11 + $0x40] sm:$0xff] }
 0x34d   : > { %v3484_v63 = vpop.eup %3483  ;;  %v2010_v30 = vmul.f32 %v1994_v5, %v1946_v45  ;;  %3282 = vmatprep.subr.bf16.mxu0 %v3281_v35 }
 0x34e   : > { %v3486_v46 = vpop.eup %3485  ;;  %v1997_v44 = vadd.f32 1.0, %v3484_v63  ;;  %3284 = vmatpush3.bf16.msra.mxu0 %v3281_v35  ;;  %v2056_v10 = vpop.permute.xlu1 %2055 }
 0x34f   : > { %v1996_v50 = vadd.f32 1.0, %v3486_v46  ;;  %v3285_v52 = vpack.c.bf16 %v2011_v43, %v2010_v30  ;;  %v1603_v21 = vpop.permute.xlu0 %1602 }
 0x350   : > { %v2013_v54 = vmul.f32 %v1997_v44, %v1949_v0  ;;  %v3361_v5 = vadd.f32 %v2056_v10, %v1603_v21  ;;  %v2485_v10 = vld [vmem:[%s4643_s11 + $0x48] sm:$0xff] }
 0x351   : > { %v2012_v48 = vmul.f32 %v1996_v50, %v1948_v49  ;;  %3286 = vmatprep.subr.bf16.mxu0 %v3285_v52  ;;  %v3341_v21 = vpack.c.bf16 %v2485_v10, %v2484_v20 }
 0x352   : > { %3288 = vmatpush3.bf16.msra.mxu0 %v3285_v52  ;;  %v2061_v12 = vpop.permute.xlu1 %2060 }
 0x353   : > { %v3289_v13 = vpack.c.bf16 %v2013_v54, %v2012_v48  ;;  %v1608_v22 = vpop.permute.xlu0 %1607 }
 0x354   : > { %v3367_v30 = vadd.f32 %v2061_v12, %v1608_v22  ;;  %v2486_v12 = vld [vmem:[%s4643_s11 + $0x50] sm:$0xff]  ;;  %v2487_v22 = vld [vmem:[%s4643_s11 + $0x58] sm:$0xff] }
 0x355   : > { %3290 = vmatprep.subr.bf16.mxu0 %v3289_v13  ;;  %v3345_v15 = vpack.c.bf16 %v2487_v22, %v2486_v12 }
 0x356   : > { %3292 = vmatpush3.bf16.msra.mxu0 %v3289_v13  ;;  %v2066_v31 = vpop.permute.xlu1 %2065 }
 0x357   : > { %v1613_v32 = vpop.permute.xlu0 %1612 }
 0x358   : > { %v3365_v52 = vadd.f32 %v2066_v31, %v1613_v32  ;;  %v4552_v32 = vld [vmem:[%s4642_s10] sm:$0x3] }
 0x359   : > { %3110 = vmatmul.mubr.f32.vlgmr.msra.gmra.mrb[52].mxu0 %v2015_v55 }
 0x35a   : > { %3112 = vmatprep.mubr.f32.mxu0 %v2016_v51  ;;  %v2071_v41 = vpop.permute.xlu1 %2070 }
 0x35b   : > { %v1618_v45 = vpop.permute.xlu0 %1617 }
 0x35d   : > { %3113 = vmatmul.mubr.f32.gmra.mrb[54].mxu0 %v2017_v56  ;;  %v3371_v56 = vadd.f32 %v2071_v41, %v1618_v45 }
 0x35e   : > { %3115 = vmatprep.mubr.f32.mxu0 %v2018_v57  ;;  %v2076_v46 = vpop.permute.xlu1 %2075 }
 0x35f   : > { %v1623_v44 = vpop.permute.xlu0 %1622 }
 0x361   : > { %3116 = vmatmul.mubr.f32.gmra.mrb[56].mxu0 %v2019_v58  ;;  %v3369_v58 = vadd.f32 %v2076_v46, %v1623_v44 }
 0x362   : > { %3118 = vmatprep.mubr.f32.mxu0 %v2020_v59  ;;  %v2081_v55 = vpop.permute.xlu1 %2080 }
 0x363   : > { %v1628_v51 = vpop.permute.xlu0 %1627 }
 0x365   : > { %3119 = vmatmul.mubr.f32.gmra.mrb[58].mxu0 %v2021_v11 }
 0x366   : > { %3121 = vmatprep.mubr.f32.mxu0 %v2022_v47  ;;  %v2086_v59 = vpop.permute.xlu1 %2085 }
 0x367   : > { %v1633_v11 = vpop.permute.xlu0 %1632 }
 0x368   : > { %v3373_v4 = vadd.f32 %v2086_v59, %v1633_v11 }
 0x369   : > { %3122 = vmatmul.mubr.f32.gmra.mrb[60].mxu0 %v2023_v53  ;;  %v3375_v53 = vadd.f32 %v2081_v55, %v1628_v51 }
 0x36a   : > { %3124 = vmatprep.mubr.f32.mxu0 %v2024_v60 }
 0x36b   : > { %v1638_v2 = vpop.permute.xlu0 %1637 }
 0x36d   : > { %3125 = vmatmul.mubr.f32.gmra.mrb[62].mxu0 %v2025_v62  ;;  %v2091_v62 = vpop.permute.xlu1 %2090 }
 0x36e   : > { %v3379_v6 = vadd.f32 %v2091_v62, %v1638_v2 }
 0x36f   : > { %v1643_v8 = vpop.permute.xlu0 %1642 }
 0x371   : > { %v2096_v61 = vpop.permute.xlu1 %2095 }
 0x372   : > { %v3377_v3 = vadd.f32 %v2096_v61, %v1643_v8 }
 0x42c   : > { %v3111_v33 = vpop.f32.mrb[52].mxu0 }
 0x42d   : > { %v2164_v26 = vpop.f32.mrb[53].mxu0  ;;  %v3358_v36 = vadd.f32 %v3357_v42, %v3111_v33  ;;  %v2269_v42 = vlaneseq }
 0x42e   : > { %v3360_v27 = vadd.f32 %v3359_v25, %v2164_v26  ;;  %v2489_v25 = vld [vmem:[%s4643_s11 + $0x68] sm:$0xff]  ;;  %v2490_v26 = vld [vmem:[%s4643_s11 + $0x70] sm:$0xff] }
 0x42f   : > { %v3349_v33 = vpack.c.bf16 %v2489_v25, %v2488_v17  ;;  %v4546_v31 = vshrl.u32 %v2269_v42, 7 }
 0x430   : > { %v3114_v23 = vpop.f32.mrb[54].mxu0  ;;  %2344 = vmatmul.mubr.f32.vlgmr.msra.gmra.mrb[24].mxu1 %v3360_v27  ;;  %v2491_v27 = vld [vmem:[%s4643_s11 + $0x78] sm:$0xff] }
 0x431   : > { %v2174_v34 = vpop.f32.mrb[55].mxu0  ;;  %2349 = vmatprep.mubr.f32.mxu1 %v3521_v1  ;;  %3328 = vmatpush3.bf16.msra.mxu1 %v3325_v24  ;;  %v3362_v63 = vadd.f32 %v3361_v5, %v3114_v23  ;;  %v2271_v23 = vsub.s32 0, %v4546_v31 }
 0x432   : > { %3330 = vmatprep.subr.bf16.mxu1 %v3329_v29  ;;  %v3364_v40 = vadd.f32 %v3363_v38, %v2174_v34 }
 0x433   : > { %v4555_v34 = vrot.slane %v4552_v32, %v2271_v23 }
 0x434   : > { %v3117_v28 = vpop.f32.mrb[56].mxu0  ;;  %2350 = vmatmul.mubr.f32.gmra.mrb[26].mxu1 %v3358_v36 }
 0x435   : > { %v2184_v39 = vpop.f32.mrb[57].mxu0  ;;  %2355 = vmatprep.mubr.f32.mxu1 %v3521_v1  ;;  %3332 = vmatpush3.bf16.msra.mxu1 %v3329_v29  ;;  %v3366_v13 = vadd.f32 %v3365_v52, %v3117_v28  ;;  %v3353_v29 = vpack.c.bf16 %v2491_v27, %v2490_v26 }
 0x436   : > { %v3368_v50 = vadd.f32 %v3367_v30, %v2184_v39  ;;  %3334 = vmatprep.subr.bf16.mxu1 %v3333_v16 }
 0x438   : > { %v3120_v35 = vpop.f32.mrb[58].mxu0  ;;  %2356 = vmatmul.mubr.f32.gmra.mrb[28].mxu1 %v3364_v40 }
 0x439   : > { %v2194_v43 = vpop.f32.mrb[59].mxu0  ;;  %2361 = vmatprep.mubr.f32.mxu1 %v3521_v1  ;;  %v3370_v47 = vadd.f32 %v3369_v58, %v3120_v35  ;;  %3336 = vmatpush3.bf16.msra.mxu1 %v3333_v16 }
 0x43a   : > { %v3372_v57 = vadd.f32 %v3371_v56, %v2194_v43 }
 0x43c   : > { %v3123_v0 = vpop.f32.mrb[60].mxu0  ;;  %2362 = vmatmul.mubr.f32.gmra.mrb[30].mxu1 %v3362_v63 }
 0x43d   : > { %v2204_v49 = vpop.f32.mrb[61].mxu0  ;;  %2367 = vmatprep.mubr.f32.mxu1 %v3521_v1  ;;  %v3374_v19 = vadd.f32 %v3373_v4, %v3123_v0 }
 0x43e   : > { %v3376_v60 = vadd.f32 %v3375_v53, %v2204_v49 }
 0x440   : > { %v3126_v54 = vpop.f32.mrb[62].mxu0  ;;  %2368 = vmatmul.mubr.f32.gmra.mrb[32].mxu1 %v3368_v50 }
 0x441   : > { %v2214_v48 = vpop.f32.mrb[63].mxu0  ;;  %2373 = vmatprep.mubr.f32.mxu1 %v3521_v1  ;;  %v3378_v24 = vadd.f32 %v3377_v3, %v3126_v54 }
 0x442   : > { %v3380_v9 = vadd.f32 %v3379_v6, %v2214_v48 }
 0x444   : > { %2374 = vmatmul.mubr.f32.gmra.mrb[34].mxu1 %v3366_v13 }
 0x445   : > { %2379 = vmatprep.mubr.f32.mxu1 %v3521_v1 }
 0x448   : > { %2380 = vmatmul.mubr.f32.gmra.mrb[36].mxu1 %v3372_v57 }
 0x449   : > { %2385 = vmatprep.mubr.f32.mxu1 %v3521_v1 }
 0x44c   : > { %2386 = vmatmul.mubr.f32.gmra.mrb[38].mxu1 %v3370_v47 }
 0x44d   : > { %2391 = vmatprep.mubr.f32.mxu1 %v3521_v1 }
 0x450   : > { %2392 = vmatmul.mubr.f32.gmra.mrb[40].mxu1 %v3376_v60 }
 0x451   : > { %2397 = vmatprep.mubr.f32.mxu1 %v3521_v1 }
 0x454   : > { %2398 = vmatmul.mubr.f32.gmra.mrb[42].mxu1 %v3374_v19 }
 0x455   : > { %2403 = vmatprep.mubr.f32.mxu1 %v3521_v1 }
 0x458   : > { %2404 = vmatmul.mubr.f32.gmra.mrb[44].mxu1 %v3380_v9 }
 0x459   : > { %2409 = vmatprep.mubr.f32.mxu1 %v3521_v1  ;;  %v2483_v1 = vld [vmem:[%s4643_s11 + $0x38] sm:$0xff] }
 0x45a   : > { %v3337_v18 = vpack.c.bf16 %v2483_v1, %v2482_v37 }
 0x45c   : > { %2410 = vmatmul.mubr.f32.gmra.mrb[46].mxu1 %v3378_v24  ;;  %3338 = vmatprep.subr.bf16.mxu1 %v3337_v18 }
 0x45d   : > { %3340 = vmatpush3.bf16.msra.mxu1 %v3337_v18 }
 0x45e   : > { %3342 = vmatprep.subr.bf16.mxu1 %v3341_v21 }
 0x461   : > { %3344 = vmatpush3.bf16.msra.mxu1 %v3341_v21 }
 0x462   : > { %3346 = vmatprep.subr.bf16.mxu1 %v3345_v15 }
 0x465   : > { %3348 = vmatpush3.bf16.msra.mxu1 %v3345_v15 }
 0x466   : > { %3350 = vmatprep.subr.bf16.mxu1 %v3349_v33 }
 0x469   : > { %3352 = vmatpush3.bf16.msra.mxu1 %v3349_v33 }
 0x46a   : > { %3354 = vmatprep.subr.bf16.mxu1 %v3353_v29 }
 0x46d   : > { %3356 = vmatpush3.bf16.msra.mxu1 %v3353_v29 }
 0x503   : > { %v2345_v36 = vpop.f32.mrb[24].mxu1 }
 0x504   : > { %v2346_v38 = vadd.f32 %v2345_v36, %v4555_v34  ;;  %v4558_v28 = vpop.f32.mrb[25].mxu1 }
 0x506   : > { %v2428_v39 = vmul.f32 0.70710677, %v2346_v38  ;;  %v2416_v52 = vmul.f32 0.5, %v2346_v38 }
 0x507   : > { %v2351_v41 = vpop.f32.mrb[26].mxu1 }
 0x508   : > { %3487 = verf.f32 %v2428_v39  ;;  %v2352_v40 = vadd.f32 %v2351_v41, %v4555_v34  ;;  %v4561_v45 = vpop.f32.mrb[27].mxu1 }
 0x50a   : > { %v2429_v5 = vmul.f32 0.70710677, %v2352_v40  ;;  %v2417_v58 = vmul.f32 0.5, %v2352_v40 }
 0x50b   : > { %v2357_v35 = vpop.f32.mrb[28].mxu1 }
 0x50c   : > { %3489 = verf.f32 %v2429_v5  ;;  %v2358_v43 = vadd.f32 %v2357_v35, %v4555_v34  ;;  %v4564_v63 = vpop.f32.mrb[29].mxu1 }
 0x50e   : > { %v2430_v30 = vmul.f32 0.70710677, %v2358_v43  ;;  %v2418_v4 = vmul.f32 0.5, %v2358_v43 }
 0x50f   : > { %v2363_v46 = vpop.f32.mrb[30].mxu1 }
 0x510   : > { %3491 = verf.f32 %v2430_v30  ;;  %v2364_v0 = vadd.f32 %v2363_v46, %v4555_v34  ;;  %v4567_v44 = vpop.f32.mrb[31].mxu1 }
 0x512   : > { %v3488_v49 = vpop.eup %3487  ;;  %v2431_v50 = vmul.f32 0.70710677, %v2364_v0  ;;  %v2419_v7 = vmul.f32 0.5, %v2364_v0 }
 0x513   : > { %v2452_v54 = vadd.f32 1.0, %v3488_v49  ;;  %v2369_v48 = vpop.f32.mrb[32].mxu1 }
 0x514   : > { %3493 = verf.f32 %v2431_v50  ;;  %v2370_v13 = vadd.f32 %v2369_v48, %v4555_v34  ;;  %v4570_v55 = vpop.f32.mrb[33].mxu1 }
 0x515   : > { %v2464_v51 = vmul.f32 %v2452_v54, %v2416_v52 }
 0x516   : > { %v3490_v56 = vpop.eup %3489  ;;  %v2432_v57 = vmul.f32 0.70710677, %v2370_v13  ;;  %v2420_v21 = vmul.f32 0.5, %v2370_v13 }
 0x517   : > { %v2453_v59 = vadd.f32 1.0, %v3490_v56  ;;  %v2375_v11 = vpop.f32.mrb[34].mxu1  ;;  %3159 = vmatprep.mubr.f32.mxu1 %v2464_v51 }
 0x518   : > { %3495 = verf.f32 %v2432_v57  ;;  %v2376_v47 = vadd.f32 %v2375_v11, %v4555_v34  ;;  %v4573_v53 = vpop.f32.mrb[35].mxu1 }
 0x519   : > { %v2465_v60 = vmul.f32 %v2453_v59, %v2417_v58 }
 0x51a   : > { %v3492_v62 = vpop.eup %3491  ;;  %v2433_v2 = vmul.f32 0.70710677, %v2376_v47  ;;  %v2421_v27 = vmul.f32 0.5, %v2376_v47 }
 0x51b   : > { %v2454_v19 = vadd.f32 1.0, %v3492_v62  ;;  %v2381_v6 = vpop.f32.mrb[36].mxu1  ;;  %3160 = vmatmul.mubr.f32.vlgmr.msra.gmra.mrb[48].mxu1 %v2465_v60 }
 0x51c   : > { %3497 = verf.f32 %v2433_v2  ;;  %v2382_v61 = vadd.f32 %v2381_v6, %v4555_v34  ;;  %v4576_v8 = vpop.f32.mrb[37].mxu1 }
 0x51d   : > { %v2466_v9 = vmul.f32 %v2454_v19, %v2418_v4 }
 0x51e   : > { %v3494_v3 = vpop.eup %3493  ;;  %v2434_v24 = vmul.f32 0.70710677, %v2382_v61  ;;  %v2422_v40 = vmul.f32 0.5, %v2382_v61 }
 0x51f   : > { %v2455_v14 = vadd.f32 1.0, %v3494_v3  ;;  %v2387_v16 = vpop.f32.mrb[38].mxu1  ;;  %3162 = vmatprep.mubr.f32.mxu1 %v2466_v9 }
 0x520   : > { %3499 = verf.f32 %v2434_v24  ;;  %v2388_v37 = vadd.f32 %v2387_v16, %v4555_v34  ;;  %v4579_v1 = vpop.f32.mrb[39].mxu1  ;;  %v2786_v16 = vld [vmem:[%s4644_s12] ss:$0 sm:$0xff] }
 0x521   : > { %v2467_v18 = vmul.f32 %v2455_v14, %v2419_v7  ;;  %v2275_v7 = vsub.s32 1, %v4546_v31 }
 0x522   : > { %v3496_v20 = vpop.eup %3495  ;;  %v2435_v10 = vmul.f32 0.70710677, %v2388_v37  ;;  %v2423_v50 = vmul.f32 0.5, %v2388_v37 }
 0x523   : > { %v2456_v12 = vadd.f32 1.0, %v3496_v20  ;;  %v2393_v22 = vpop.f32.mrb[40].mxu1  ;;  %3163 = vmatmul.mubr.f32.gmra.mrb[50].mxu1 %v2467_v18  ;;  %v2276_v14 = vrot.slane %v4552_v32, %v2275_v7 }
 0x524   : > { %3501 = verf.f32 %v2435_v10  ;;  %v2394_v15 = vadd.f32 %v2393_v22, %v4555_v34  ;;  %v4582_v17 = vpop.f32.mrb[41].mxu1 }
 0x525   : > { %v2468_v25 = vmul.f32 %v2456_v12, %v2420_v21  ;;  %v2354_v18 = vadd.f32 %v4561_v45, %v2276_v14  ;;  %v2348_v21 = vadd.f32 %v4558_v28, %v2276_v14  ;;  %v2366_v22 = vadd.f32 %v4567_v44, %v2276_v14 }
 0x526   : > { %v3498_v33 = vpop.eup %3497  ;;  %v2436_v26 = vmul.f32 0.70710677, %v2394_v15  ;;  %v2424_v58 = vmul.f32 0.5, %v2394_v15  ;;  %v2372_v44 = vadd.f32 %v4570_v55, %v2276_v14 }
 0x527   : > { %v2457_v29 = vadd.f32 1.0, %v3498_v33  ;;  %v2399_v42 = vpop.f32.mrb[42].mxu1  ;;  %3165 = vmatprep.mubr.f32.mxu1 %v2468_v25  ;;  %v2360_v25 = vadd.f32 %v4564_v63, %v2276_v14 }
 0x528   : > { %3503 = verf.f32 %v2436_v26  ;;  %v2400_v23 = vadd.f32 %v2399_v42, %v4555_v34  ;;  %v4585_v36 = vpop.f32.mrb[43].mxu1  ;;  %v2378_v42 = vadd.f32 %v4573_v53, %v2276_v14  ;;  %v2384_v53 = vadd.f32 %v4576_v8, %v2276_v14 }
 0x529   : > { %v2469_v38 = vmul.f32 %v2457_v29, %v2421_v27 }
 0x52a   : > { %v3500_v39 = vpop.eup %3499  ;;  %v2437_v41 = vmul.f32 0.70710677, %v2400_v23  ;;  %v2425_v60 = vmul.f32 0.5, %v2400_v23 }
 0x52b   : > { %v2458_v5 = vadd.f32 1.0, %v3500_v39  ;;  %v2405_v35 = vpop.f32.mrb[44].mxu1  ;;  %3166 = vmatmul.mubr.f32.gmra.mrb[52].mxu1 %v2469_v38 }
 0x52c   : > { %3505 = verf.f32 %v2437_v41  ;;  %v2406_v43 = vadd.f32 %v2405_v35, %v4555_v34  ;;  %v4588_v30 = vpop.f32.mrb[45].mxu1 }
 0x52d   : > { %v2470_v46 = vmul.f32 %v2458_v5, %v2422_v40  ;;  %v2390_v5 = vadd.f32 %v4579_v1, %v2276_v14  ;;  %v2396_v1 = vadd.f32 %v4582_v17, %v2276_v14 }
 0x52e   : > { %v3502_v0 = vpop.eup %3501  ;;  %v2438_v49 = vmul.f32 0.70710677, %v2406_v43  ;;  %v2426_v19 = vmul.f32 0.5, %v2406_v43 }
 0x52f   : > { %v2459_v52 = vadd.f32 1.0, %v3502_v0  ;;  %v2411_v54 = vpop.f32.mrb[46].mxu1  ;;  %3168 = vmatprep.mubr.f32.mxu1 %v2470_v46 }
 0x530   : > { %3507 = verf.f32 %v2438_v49  ;;  %v2412_v48 = vadd.f32 %v2411_v54, %v4555_v34  ;;  %v4591_v13 = vpop.f32.mrb[47].mxu1 }
 0x531   : > { %v2471_v51 = vmul.f32 %v2459_v52, %v2423_v50  ;;  %v2402_v50 = vadd.f32 %v4585_v36, %v2276_v14 }
 0x532   : > { %v3504_v56 = vpop.eup %3503  ;;  %v2439_v57 = vmul.f32 0.70710677, %v2412_v48  ;;  %v2427_v9 = vmul.f32 0.5, %v2412_v48 }
 0x533   : > { %v2460_v59 = vadd.f32 1.0, %v3504_v56  ;;  %3169 = vmatmul.mubr.f32.gmra.mrb[54].mxu1 %v2471_v51 }
 0x534   : > { %3509 = verf.f32 %v2439_v57  ;;  %v2414_v57 = vadd.f32 %v4591_v13, %v2276_v14 }
 0x535   : > { %v2472_v11 = vmul.f32 %v2460_v59, %v2424_v58 }
 0x536   : > { %v3506_v47 = vpop.eup %3505 }
 0x537   : > { %v2461_v62 = vadd.f32 1.0, %v3506_v47  ;;  %3171 = vmatprep.mubr.f32.mxu1 %v2472_v11  ;;  %v2408_v11 = vadd.f32 %v4588_v30, %v2276_v14 }
 0x539   : > { %v2473_v2 = vmul.f32 %v2461_v62, %v2425_v60 }
 0x53a   : > { %v3508_v4 = vpop.eup %3507 }
 0x53b   : > { %v2462_v6 = vadd.f32 1.0, %v3508_v4  ;;  %3172 = vmatmul.mubr.f32.gmra.mrb[56].mxu1 %v2473_v2 }
 0x53d   : > { %v2474_v34 = vmul.f32 %v2462_v6, %v2426_v19 }
 0x53e   : > { %v3510_v61 = vpop.eup %3509 }
 0x53f   : > { %v2463_v3 = vadd.f32 1.0, %v3510_v61  ;;  %3174 = vmatprep.mubr.f32.mxu1 %v2474_v34 }
 0x541   : > { %v2475_v24 = vmul.f32 %v2463_v3, %v2427_v9 }
 0x543   : > { %3175 = vmatmul.mubr.f32.gmra.mrb[58].mxu1 %v2475_v24 }
 0x5ee   : > { %v3161_v37 = vpop.f32.mrb[48].mxu1 }
 0x5ef   : > { %v2571_v20 = vadd.f32 %v3161_v37, %v2786_v16  ;;  %v2565_v10 = vpop.f32.mrb[49].mxu1 }
 0x5f0   : > { %v2566_v31 = vadd.f32 %v2786_v16, %v2565_v10 }
 0x5f1   : > { %v2625_v32 = vadd.f32 %v2571_v20, %v2354_v18 }
 0x5f2   : > { %v2624_v12 = vadd.f32 %v2566_v31, %v2348_v21 }
 0x5f3   : > { %2637 = vst [vmem:[%s4605_s16 + $0x8] sm:$0xff] %v2625_v32 }
 0x5f4   : > { %2636 = vst [vmem:[%s4605_s16] sm:$0xff] %v2624_v12 }
 0x5f6   : > { %v3164_v45 = vpop.f32.mrb[50].mxu1 }
 0x5f7   : > { %v2581_v15 = vadd.f32 %v3164_v45, %v2786_v16  ;;  %v2575_v28 = vpop.f32.mrb[51].mxu1 }
 0x5f8   : > { %v2576_v33 = vadd.f32 %v2786_v16, %v2575_v28 }
 0x5f9   : > { %v2627_v26 = vadd.f32 %v2581_v15, %v2366_v22 }
 0x5fa   : > { %v2626_v27 = vadd.f32 %v2576_v33, %v2360_v25 }
 0x5fb   : > { %2639 = vst [vmem:[%s4605_s16 + $0x18] sm:$0xff] %v2627_v26 }
 0x5fc   : > { %2638 = vst [vmem:[%s4605_s16 + $0x10] sm:$0xff] %v2626_v27 }
 0x5fe   : > { %v3167_v29 = vpop.f32.mrb[52].mxu1 }
 0x5ff   : > { %v2591_v23 = vadd.f32 %v3167_v29, %v2786_v16  ;;  %v2585_v38 = vpop.f32.mrb[53].mxu1 }
 0x600   : > { %v2586_v39 = vadd.f32 %v2786_v16, %v2585_v38 }
 0x601   : > { %v2629_v41 = vadd.f32 %v2591_v23, %v2378_v42 }
 0x602   : > { %v2628_v40 = vadd.f32 %v2586_v39, %v2372_v44 }
 0x603   : > { %2641 = vst [vmem:[%s4605_s16 + $0x28] sm:$0xff] %v2629_v41 }
 0x604   : > { %2640 = vst [vmem:[%s4605_s16 + $0x20] sm:$0xff] %v2628_v40 }
 0x606   : > { %v3170_v63 = vpop.f32.mrb[54].mxu1 }
 0x607   : > { %v2601_v35 = vadd.f32 %v3170_v63, %v2786_v16  ;;  %v2595_v43 = vpop.f32.mrb[55].mxu1 }
 0x608   : > { %v2596_v46 = vadd.f32 %v2786_v16, %v2595_v43 }
 0x609   : > { %v2631_v0 = vadd.f32 %v2601_v35, %v2390_v5 }
 0x60a   : > { %v2630_v49 = vadd.f32 %v2596_v46, %v2384_v53 }
 0x60b   : > { %2643 = vst [vmem:[%s4605_s16 + $0x38] sm:$0xff] %v2631_v0 }
 0x60c   : > { %2642 = vst [vmem:[%s4605_s16 + $0x30] sm:$0xff] %v2630_v49 }
 0x60e   : > { %v3173_v55 = vpop.f32.mrb[56].mxu1 }
 0x60f   : > { %v2611_v52 = vadd.f32 %v3173_v55, %v2786_v16  ;;  %v2605_v54 = vpop.f32.mrb[57].mxu1 }
 0x610   : > { %v2606_v48 = vadd.f32 %v2786_v16, %v2605_v54 }
 0x611   : > { %v2633_v51 = vadd.f32 %v2611_v52, %v2402_v50 }
 0x612   : > { %v2632_v56 = vadd.f32 %v2606_v48, %v2396_v1 }
 0x613   : > { %2645 = vst [vmem:[%s4605_s16 + $0x48] sm:$0xff] %v2633_v51 }
 0x614   : > { %2644 = vst [vmem:[%s4605_s16 + $0x40] sm:$0xff] %v2632_v56 }
 0x616   : > { %v3176_v8 = vpop.f32.mrb[58].mxu1 }
 0x617   : > { %v2621_v58 = vadd.f32 %v3176_v8, %v2786_v16  ;;  %v2615_v59 = vpop.f32.mrb[59].mxu1 }
 0x618   : > { %v2616_v47 = vadd.f32 %v2786_v16, %v2615_v59 }
 0x619   : > { %v2635_v36 = vadd.f32 %v2621_v58, %v2414_v57 }
 0x61a   : > { %v2634_v60 = vadd.f32 %v2616_v47, %v2408_v11 }
 0x61b   : > { %2647 = vst [vmem:[%s4605_s16 + $0x58] sm:$0xff] %v2635_v36 }
 0x61c   : > { %2646 = vst [vmem:[%s4605_s16 + $0x50] sm:$0xff] %v2634_v60 }
 0x61d PF: > { %s23_s25 = sadd.s32 1, %s3517_s25  }
 0x61e   : > { %p20_p4 = scmp.ge.s32.totalorder %s23_s25, 4  }
 0x620   :  { %22 = sbr.rel (!%p20_p4) target bundleno = 1 (0x1), region = 102 }

</bundles_post_ra>
